<compile_context>
chip_gen: v7x
topology: tpu7x:2x2x1
jax: 0.10.0
libtpu: 0.0.40
codegen_flags: <defaults>
</compile_context>

<pallas_src>
import jax
import jax.numpy as jnp
from jax import lax
from jax.experimental import pallas as pl
from jax.experimental.pallas import tpu as pltpu


def _fp_kernel(xyz1_ref, xyz2_ref, p1_ref, p2_ref,
               w1a_ref, w1b_ref, b1_ref, w2_ref, b2_ref, o_ref):
    f32 = jnp.float32
    bf16 = jnp.bfloat16

    x1 = xyz1_ref[0]          # (3, TN)  f32
    x2 = xyz2_ref[0]          # (3, Mp)  f32
    p1 = p1_ref[0]            # (C1, TN) bf16
    p2 = p2_ref[0]            # (C2, Mp) bf16

    TN = x1.shape[1]
    Mp = x2.shape[1]

    # ---- pairwise squared distances, one K=5 MXU contraction ------------------------
    # d[n, m] = ||x1[:,n]||^2 + ||x2[:,m]||^2 - 2<x1[:,n], x2[:,m]>
    n1 = jnp.sum(x1 * x1, axis=0, keepdims=True)                     # (1, TN)
    n2 = jnp.sum(x2 * x2, axis=0, keepdims=True)                     # (1, Mp)
    a1 = jnp.concatenate([-2.0 * x1, n1, jnp.ones((1, TN), f32)], axis=0)   # (5, TN)
    a2 = jnp.concatenate([x2, jnp.ones((1, Mp), f32), n2], axis=0)          # (5, Mp)
    d = lax.dot_general(a1, a2, (((0,), (0,)), ((), ())),
                        preferred_element_type=f32)                  # (TN, Mp)
    d = jnp.maximum(d, 0.0)

    # ---- three_nn: 3 smallest per row via packed (dist, col) int32 keys -------------
    # d >= 0, so its f32 bit pattern is monotone as int32.  Clear the low bits and OR in
    # the column index -> a single row-min gives both the distance and the argmin
    # (first-index tie break).  Truncating the low log2(Mp) mantissa bits perturbs the
    # distance by < Mp/2^23 relative, negligible for the weights.
    mbits = max((Mp - 1).bit_length(), 1)
    low_mask = (1 << mbits) - 1
    keep_mask = jnp.int32(~low_mask)
    col = lax.broadcasted_iota(jnp.int32, (TN, Mp), 1)
    dbits = pltpu.bitcast(d, jnp.int32)
    key = jnp.bitwise_or(jnp.bitwise_and(dbits, keep_mask), col)
    sentinel = jnp.int32(jnp.iinfo(jnp.int32).max)

    wacc = jnp.zeros((TN, Mp), f32)
    norm = jnp.zeros((TN, 1), f32)
    for _ in range(3):
        kmin = jnp.min(key, axis=1, keepdims=True)                   # (TN, 1) single XLU min
        sel = key == kmin                                            # exactly one hit per row
        dmin = pltpu.bitcast(jnp.bitwise_and(kmin, keep_mask), f32)  # (TN, 1)
        recip = 1.0 / jnp.maximum(jnp.sqrt(dmin), 1e-10)             # (TN, 1)
        wacc = jnp.where(sel, recip, wacc)                           # disjoint selections
        norm = norm + recip
        key = jnp.where(sel, sentinel, key)

    w = (wacc * (1.0 / norm)).astype(bf16)                           # (TN, Mp), rows sum ~1

    # ---- three_interpolate + MLP layer 1 (reassociated) ------------------------------
    # w1a @ (p2 @ w^T) == (w1a @ p2) @ w^T ; p2m is tiny (c_mid, Mp) and batch-constant.
    p2m = jnp.dot(w1a_ref[...], p2, preferred_element_type=f32).astype(bf16)   # (c_mid, Mp)
    h = lax.dot_general(p2m, w, (((1,), (1,)), ((), ())),
                        preferred_element_type=f32)                  # (c_mid, TN)
    h = h + jnp.dot(w1b_ref[...], p1, preferred_element_type=f32)    # + points1 branch
    h = jnp.maximum(h + b1_ref[...], 0.0)

    # ---- MLP layer 2 ------------------------------------------------------------------
    out = jnp.dot(w2_ref[...], h.astype(bf16), preferred_element_type=f32) + b2_ref[...]
    o_ref[0] = jnp.maximum(out, 0.0).astype(o_ref.dtype)


def _round_up(v, m):
    return (v + m - 1) // m * m


def pointnet_fp_module(xyz1, xyz2, points1, points2, params, *, tile_n=256):
    w1a, w1b, b1, w2, b2 = params
    B, _, N = xyz1.shape
    M = xyz2.shape[2]
    C1 = points1.shape[1]
    C2 = points2.shape[1]
    c_mid = w1a.shape[0]
    c_out = w2.shape[0]

    # Lane-dense padding (multiples of 128) + 128-aligned N tile.
    TN = _round_up(min(tile_n, _round_up(N, 128)), 128)
    Np = _round_up(N, TN)
    Mp = _round_up(M, 128)

    xyz1_p = jnp.pad(xyz1, ((0, 0), (0, 0), (0, Np - N)))
    # Padded xyz2 columns sit very far away so real queries never select them.
    xyz2_p = jnp.pad(xyz2, ((0, 0), (0, 0), (0, Mp - M)), constant_values=1e6)
    p1_p = jnp.pad(points1, ((0, 0), (0, 0), (0, Np - N))).astype(jnp.bfloat16)
    p2_p = jnp.pad(points2, ((0, 0), (0, 0), (0, Mp - M))).astype(jnp.bfloat16)

    w1a_bf = w1a.astype(jnp.bfloat16)
    w1b_bf = w1b.astype(jnp.bfloat16)
    w2_bf = w2.astype(jnp.bfloat16)

    out = pl.pallas_call(
        _fp_kernel,
        out_shape=jax.ShapeDtypeStruct((B, c_out, Np), jnp.float32),
        grid=(B, Np // TN),
        in_specs=[
            pl.BlockSpec((1, 3, TN), lambda b, n: (b, 0, n)),    # xyz1 (blocked over N)
            pl.BlockSpec((1, 3, Mp), lambda b, n: (b, 0, 0)),    # xyz2 (full M)
            pl.BlockSpec((1, C1, TN), lambda b, n: (b, 0, n)),   # points1 (blocked over N)
            pl.BlockSpec((1, C2, Mp), lambda b, n: (b, 0, 0)),   # points2 (full M)
            pl.BlockSpec((c_mid, C2), lambda b, n: (0, 0)),      # w1a (interp branch)
            pl.BlockSpec((c_mid, C1), lambda b, n: (0, 0)),      # w1b (points1 branch)
            pl.BlockSpec((c_mid, 1), lambda b, n: (0, 0)),       # b1
            pl.BlockSpec((c_out, c_mid), lambda b, n: (0, 0)),   # w2
            pl.BlockSpec((c_out, 1), lambda b, n: (0, 0)),       # b2
        ],
        out_specs=pl.BlockSpec((1, c_out, TN), lambda b, n: (b, 0, n)),
        compiler_params=pltpu.CompilerParams(
            dimension_semantics=("parallel", "parallel"),
            vmem_limit_bytes=48 * 1024 * 1024),
    )(xyz1_p, xyz2_p, p1_p, p2_p, w1a_bf, w1b_bf, b1, w2_bf, b2)

    return out[:, :, :N]


def make_params(key, in_channel, in_channel_points1, mlp):
    """Deterministic Conv1d(k=1) + BatchNorm1d params, BN folded into scale/shift."""
    eps = 1e-5
    c_in = in_channel + in_channel_points1
    layers = []
    last = c_in
    for out_c in mlp:
        key, kw, kb, kg, kbt = jax.random.split(key, 5)
        w = 0.1 * jax.random.normal(kw, (out_c, last), jnp.float32)
        b = 0.1 * jax.random.normal(kb, (out_c,), jnp.float32)
        gamma = 1.0 + 0.1 * jax.random.normal(kg, (out_c,), jnp.float32)
        beta = 0.1 * jax.random.normal(kbt, (out_c,), jnp.float32)
        running_mean = jnp.zeros((out_c,), jnp.float32)
        running_var = jnp.ones((out_c,), jnp.float32)
        scale = gamma / jnp.sqrt(running_var + eps)
        w_f = scale[:, None] * w
        b_f = scale * (b - running_mean) + beta
        layers.append((w_f, b_f))
        last = out_c
    (w1, b1), (w2, b2) = layers
    w1a = w1[:, :in_channel]                 # multiplies interpolated points (cat order)
    w1b = w1[:, in_channel:]                 # multiplies points1
    return (w1a, w1b, b1[:, None], w2, b2[:, None])


def reference(xyz1, xyz2, points1, points2, params):
    """Pure-JAX f32 reference of the PyTorch forward (eval-mode BN)."""
    w1a, w1b, b1, w2, b2 = params
    d = jnp.sum((xyz1[:, :, :, None] - xyz2[:, :, None, :]) ** 2, axis=1)  # (B, N, M)
    neg, idx = lax.top_k(-d, 3)
    dist = jnp.sqrt(jnp.maximum(-neg, 0.0))
    recip = 1.0 / jnp.maximum(dist, 1e-10)
    weight = recip / jnp.sum(recip, axis=-1, keepdims=True)                # (B, N, 3)
    gathered = jnp.take_along_axis(points2[:, :, None, :], idx[:, None, :, :], axis=3)
    interp = jnp.sum(gathered * weight[:, None, :, :], axis=-1)            # (B, C2, N)
    h = (jnp.einsum('oc,bcn->bon', w1a, interp) +
         jnp.einsum('oc,bcn->bon', w1b, points1) + b1[None])
    h = jnp.maximum(h, 0.0)
    out = jnp.einsum('oc,bcn->bon', w2, h) + b2[None]
    return jnp.maximum(out, 0.0)


if __name__ == "__main__":
    B, N, M = 2, 16, 8
    in_channel = 8            # channels of points2
    in_channel_points1 = 8    # channels of points1 (use_points1=True)
    mlp = [32, 16]

    key = jax.random.PRNGKey(0)
    k1, k2, k3, k4, kp = jax.random.split(key, 5)
    xyz1 = jax.random.normal(k1, (B, 3, N), jnp.float32)
    xyz2 = jax.random.normal(k2, (B, 3, M), jnp.float32)
    points1 = jax.random.normal(k3, (B, in_channel_points1, N), jnp.float32)
    points2 = jax.random.normal(k4, (B, in_channel, M), jnp.float32)
    params = make_params(kp, in_channel, in_channel_points1, mlp)

    out = pointnet_fp_module(xyz1, xyz2, points1, points2, params)
    out = jax.block_until_ready(out)

    ref = jax.block_until_ready(reference(xyz1, xyz2, points1, points2, params))
    assert out.shape == (B, mlp[-1], N)
    # Tolerance accounts for bf16 matmul operands in the kernel (f32 accumulation).
    assert jnp.allclose(out, ref, rtol=5e-2, atol=5e-2), float(jnp.max(jnp.abs(out - ref)))

    print("KERNEL_OK")
</pallas_src>

<mosaic_0001>
module attributes {stable_mosaic.version = 11 : i64} {
  func.func @_fp_kernel(%arg0: i32, %arg1: i32, %arg2: memref<1x3x128xf32, #tpu.memory_space<vmem>>, %arg3: memref<1x3x128xf32, #tpu.memory_space<vmem>>, %arg4: memref<1x8x128xbf16, #tpu.memory_space<vmem>>, %arg5: memref<1x8x128xbf16, #tpu.memory_space<vmem>>, %arg6: memref<32x8xbf16, #tpu.memory_space<vmem>>, %arg7: memref<32x8xbf16, #tpu.memory_space<vmem>>, %arg8: memref<32x1xf32, #tpu.memory_space<vmem>>, %arg9: memref<16x32xbf16, #tpu.memory_space<vmem>>, %arg10: memref<16x1xf32, #tpu.memory_space<vmem>>, %arg11: memref<1x16x128xf32, #tpu.memory_space<vmem>>) attributes {dimension_semantics = [#tpu.dimension_semantics<parallel>, #tpu.dimension_semantics<parallel>], iteration_bounds = array<i64: 2, 1>, scalar_prefetch = 0 : i64, scratch_operands = 0 : i64, tpu.core_type = #tpu.core_type<tc>, window_params = [{transform_indices = @transform_0, window_bounds = array<i64: 1, 3, 128>}, {transform_indices = @transform_1, window_bounds = array<i64: 1, 3, 128>}, {transform_indices = @transform_2, window_bounds = array<i64: 1, 8, 128>}, {transform_indices = @transform_3, window_bounds = array<i64: 1, 8, 128>}, {pipeline_mode = #tpu.pipeline_mode<synchronous>, transform_indices = @transform_4, window_bounds = array<i64: 32, 8>}, {pipeline_mode = #tpu.pipeline_mode<synchronous>, transform_indices = @transform_5, window_bounds = array<i64: 32, 8>}, {pipeline_mode = #tpu.pipeline_mode<synchronous>, transform_indices = @transform_6, window_bounds = array<i64: 32, 1>}, {pipeline_mode = #tpu.pipeline_mode<synchronous>, transform_indices = @transform_7, window_bounds = array<i64: 16, 32>}, {pipeline_mode = #tpu.pipeline_mode<synchronous>, transform_indices = @transform_8, window_bounds = array<i64: 16, 1>}, {transform_indices = @transform_9, window_bounds = array<i64: 1, 16, 128>}]} {
    %c0 = arith.constant 0 : index
    %c0_0 = arith.constant 0 : index
    %c0_1 = arith.constant 0 : index
    %0 = vector.load %arg2[%c0, %c0_0, %c0_1] : memref<1x3x128xf32, #tpu.memory_space<vmem>>, vector<1x3x128xf32>
    %1 = vector.shape_cast %0 : vector<1x3x128xf32> to vector<3x128xf32>
    %c0_2 = arith.constant 0 : index
    %c0_3 = arith.constant 0 : index
    %c0_4 = arith.constant 0 : index
    %2 = vector.load %arg3[%c0_2, %c0_3, %c0_4] : memref<1x3x128xf32, #tpu.memory_space<vmem>>, vector<1x3x128xf32>
    %3 = vector.shape_cast %2 : vector<1x3x128xf32> to vector<3x128xf32>
    %c0_5 = arith.constant 0 : index
    %c0_6 = arith.constant 0 : index
    %c0_7 = arith.constant 0 : index
    %4 = vector.load %arg4[%c0_5, %c0_6, %c0_7] : memref<1x8x128xbf16, #tpu.memory_space<vmem>>, vector<1x8x128xbf16>
    %5 = vector.shape_cast %4 : vector<1x8x128xbf16> to vector<8x128xbf16>
    %c0_8 = arith.constant 0 : index
    %c0_9 = arith.constant 0 : index
    %c0_10 = arith.constant 0 : index
    %6 = vector.load %arg5[%c0_8, %c0_9, %c0_10] : memref<1x8x128xbf16, #tpu.memory_space<vmem>>, vector<1x8x128xbf16>
    %7 = vector.shape_cast %6 : vector<1x8x128xbf16> to vector<8x128xbf16>
    %8 = arith.mulf %1, %1 : vector<3x128xf32>
    %cst = arith.constant dense<0.000000e+00> : vector<128xf32>
    %9 = vector.multi_reduction <add>, %8, %cst [0] : vector<3x128xf32> to vector<128xf32>
    %10 = vector.shape_cast %9 : vector<128xf32> to vector<1x128xf32>
    %11 = arith.mulf %3, %3 : vector<3x128xf32>
    %cst_11 = arith.constant dense<0.000000e+00> : vector<128xf32>
    %12 = vector.multi_reduction <add>, %11, %cst_11 [0] : vector<3x128xf32> to vector<128xf32>
    %13 = vector.shape_cast %12 : vector<128xf32> to vector<1x128xf32>
    %cst_12 = arith.constant -2.000000e+00 : f32
    %14 = vector.broadcast %cst_12 : f32 to vector<3x128xf32>
    %15 = arith.mulf %14, %1 : vector<3x128xf32>
    %cst_13 = arith.constant 1.000000e+00 : f32
    %16 = vector.broadcast %cst_13 : f32 to vector<1x128xf32>
    %17 = tpu.concatenate %15, %10, %16 in 0 : vector<3x128xf32>, vector<1x128xf32>, vector<1x128xf32> -> vector<5x128xf32>
    %cst_14 = arith.constant 1.000000e+00 : f32
    %18 = vector.broadcast %cst_14 : f32 to vector<1x128xf32>
    %19 = tpu.concatenate %3, %18, %13 in 0 : vector<3x128xf32>, vector<1x128xf32>, vector<1x128xf32> -> vector<5x128xf32>
    %cst_15 = arith.constant dense<0.000000e+00> : vector<128x128xf32>
    %20 = tpu.matmul %17, %19, %cst_15 {dimension_numbers = #tpu.dot_dimension_numbers<[0], [0], [1], [1], [0, 1, 1, 1], [], []>} : vector<5x128xf32>, vector<5x128xf32>, vector<128x128xf32> -> vector<128x128xf32>
    %cst_16 = arith.constant 0.000000e+00 : f32
    %21 = vector.broadcast %cst_16 : f32 to vector<128x128xf32>
    %22 = arith.maximumf %20, %21 : vector<128x128xf32>
    %23 = tpu.iota {dimensions = array<i32: 1>} : vector<128x128xi32>
    %24 = tpu.bitcast %22 : vector<128x128xf32> -> vector<128x128xi32>
    %c-128_i32 = arith.constant -128 : i32
    %25 = vector.broadcast %c-128_i32 : i32 to vector<128x128xi32>
    %26 = arith.andi %24, %25 : vector<128x128xi32>
    %27 = arith.ori %26, %23 : vector<128x128xi32>
    %cst_17 = arith.constant 0.000000e+00 : f32
    %28 = vector.broadcast %cst_17 : f32 to vector<128x128xf32>
    %cst_18 = arith.constant 0.000000e+00 : f32
    %29 = vector.broadcast %cst_18 : f32 to vector<128x1xf32>
    %cst_19 = arith.constant dense<2147483647> : vector<128xi32>
    %30 = vector.multi_reduction <minsi>, %27, %cst_19 [1] : vector<128x128xi32> to vector<128xi32>
    %31 = vector.shape_cast %30 : vector<128xi32> to vector<128x1xi32>
    %32 = vector.broadcast %31 : vector<128x1xi32> to vector<128x128xi32>
    %33 = arith.cmpi eq, %27, %32 : vector<128x128xi32>
    %c-128_i32_20 = arith.constant -128 : i32
    %34 = vector.broadcast %c-128_i32_20 : i32 to vector<128x1xi32>
    %35 = arith.andi %31, %34 : vector<128x1xi32>
    %36 = tpu.bitcast %35 : vector<128x1xi32> -> vector<128x1xf32>
    %37 = math.sqrt %36 : vector<128x1xf32>
    %cst_21 = arith.constant 1.000000e-10 : f32
    %38 = vector.broadcast %cst_21 : f32 to vector<128x1xf32>
    %39 = arith.maximumf %37, %38 : vector<128x1xf32>
    %cst_22 = arith.constant 1.000000e+00 : f32
    %40 = vector.broadcast %cst_22 : f32 to vector<128x1xf32>
    %41 = arith.divf %40, %39 : vector<128x1xf32>
    %42 = vector.shape_cast %41 : vector<128x1xf32> to vector<128x1xf32>
    %43 = vector.broadcast %42 : vector<128x1xf32> to vector<128x128xf32>
    %44 = arith.select %33, %43, %28 : vector<128x128xi1>, vector<128x128xf32>
    %45 = arith.addf %29, %41 : vector<128x1xf32>
    %c2147483647_i32 = arith.constant 2147483647 : i32
    %46 = vector.broadcast %c2147483647_i32 : i32 to vector<128x128xi32>
    %47 = arith.select %33, %46, %27 : vector<128x128xi1>, vector<128x128xi32>
    %cst_23 = arith.constant dense<2147483647> : vector<128xi32>
    %48 = vector.multi_reduction <minsi>, %47, %cst_23 [1] : vector<128x128xi32> to vector<128xi32>
    %49 = vector.shape_cast %48 : vector<128xi32> to vector<128x1xi32>
    %50 = vector.broadcast %49 : vector<128x1xi32> to vector<128x128xi32>
    %51 = arith.cmpi eq, %47, %50 : vector<128x128xi32>
    %c-128_i32_24 = arith.constant -128 : i32
    %52 = vector.broadcast %c-128_i32_24 : i32 to vector<128x1xi32>
    %53 = arith.andi %49, %52 : vector<128x1xi32>
    %54 = tpu.bitcast %53 : vector<128x1xi32> -> vector<128x1xf32>
    %55 = math.sqrt %54 : vector<128x1xf32>
    %cst_25 = arith.constant 1.000000e-10 : f32
    %56 = vector.broadcast %cst_25 : f32 to vector<128x1xf32>
    %57 = arith.maximumf %55, %56 : vector<128x1xf32>
    %cst_26 = arith.constant 1.000000e+00 : f32
    %58 = vector.broadcast %cst_26 : f32 to vector<128x1xf32>
    %59 = arith.divf %58, %57 : vector<128x1xf32>
    %60 = vector.shape_cast %59 : vector<128x1xf32> to vector<128x1xf32>
    %61 = vector.broadcast %60 : vector<128x1xf32> to vector<128x128xf32>
    %62 = arith.select %51, %61, %44 : vector<128x128xi1>, vector<128x128xf32>
    %63 = arith.addf %45, %59 : vector<128x1xf32>
    %c2147483647_i32_27 = arith.constant 2147483647 : i32
    %64 = vector.broadcast %c2147483647_i32_27 : i32 to vector<128x128xi32>
    %65 = arith.select %51, %64, %47 : vector<128x128xi1>, vector<128x128xi32>
    %cst_28 = arith.constant dense<2147483647> : vector<128xi32>
    %66 = vector.multi_reduction <minsi>, %65, %cst_28 [1] : vector<128x128xi32> to vector<128xi32>
    %67 = vector.shape_cast %66 : vector<128xi32> to vector<128x1xi32>
    %68 = vector.broadcast %67 : vector<128x1xi32> to vector<128x128xi32>
    %69 = arith.cmpi eq, %65, %68 : vector<128x128xi32>
    %c-128_i32_29 = arith.constant -128 : i32
    %70 = vector.broadcast %c-128_i32_29 : i32 to vector<128x1xi32>
    %71 = arith.andi %67, %70 : vector<128x1xi32>
    %72 = tpu.bitcast %71 : vector<128x1xi32> -> vector<128x1xf32>
    %73 = math.sqrt %72 : vector<128x1xf32>
    %cst_30 = arith.constant 1.000000e-10 : f32
    %74 = vector.broadcast %cst_30 : f32 to vector<128x1xf32>
    %75 = arith.maximumf %73, %74 : vector<128x1xf32>
    %cst_31 = arith.constant 1.000000e+00 : f32
    %76 = vector.broadcast %cst_31 : f32 to vector<128x1xf32>
    %77 = arith.divf %76, %75 : vector<128x1xf32>
    %78 = vector.shape_cast %77 : vector<128x1xf32> to vector<128x1xf32>
    %79 = vector.broadcast %78 : vector<128x1xf32> to vector<128x128xf32>
    %80 = arith.select %69, %79, %62 : vector<128x128xi1>, vector<128x128xf32>
    %81 = arith.addf %63, %77 : vector<128x1xf32>
    %cst_32 = arith.constant 1.000000e+00 : f32
    %82 = vector.broadcast %cst_32 : f32 to vector<128x1xf32>
    %83 = arith.divf %82, %81 : vector<128x1xf32>
    %84 = vector.broadcast %83 : vector<128x1xf32> to vector<128x128xf32>
    %85 = arith.mulf %80, %84 : vector<128x128xf32>
    %86 = arith.truncf %85 : vector<128x128xf32> to vector<128x128xbf16>
    %c0_33 = arith.constant 0 : index
    %c0_34 = arith.constant 0 : index
    %87 = vector.load %arg6[%c0_33, %c0_34] : memref<32x8xbf16, #tpu.memory_space<vmem>>, vector<32x8xbf16>
    %cst_35 = arith.constant dense<0.000000e+00> : vector<32x128xf32>
    %88 = tpu.matmul %87, %7, %cst_35 {dimension_numbers = #tpu.dot_dimension_numbers<[1], [0], [0], [1], [0, 0, 1, 1], [], []>} : vector<32x8xbf16>, vector<8x128xbf16>, vector<32x128xf32> -> vector<32x128xf32>
    %89 = arith.truncf %88 : vector<32x128xf32> to vector<32x128xbf16>
    %cst_36 = arith.constant dense<0.000000e+00> : vector<32x128xf32>
    %90 = tpu.matmul %89, %86, %cst_36 {dimension_numbers = #tpu.dot_dimension_numbers<[1], [1], [0], [0], [0, 0, 1, 0], [], []>} : vector<32x128xbf16>, vector<128x128xbf16>, vector<32x128xf32> -> vector<32x128xf32>
    %c0_37 = arith.constant 0 : index
    %c0_38 = arith.constant 0 : index
    %91 = vector.load %arg7[%c0_37, %c0_38] : memref<32x8xbf16, #tpu.memory_space<vmem>>, vector<32x8xbf16>
    %cst_39 = arith.constant dense<0.000000e+00> : vector<32x128xf32>
    %92 = tpu.matmul %91, %5, %cst_39 {dimension_numbers = #tpu.dot_dimension_numbers<[1], [0], [0], [1], [0, 0, 1, 1], [], []>} : vector<32x8xbf16>, vector<8x128xbf16>, vector<32x128xf32> -> vector<32x128xf32>
    %93 = arith.addf %90, %92 : vector<32x128xf32>
    %c0_40 = arith.constant 0 : index
    %c0_41 = arith.constant 0 : index
    %94 = vector.load %arg8[%c0_40, %c0_41] : memref<32x1xf32, #tpu.memory_space<vmem>>, vector<32x1xf32>
    %95 = vector.broadcast %94 : vector<32x1xf32> to vector<32x128xf32>
    %96 = arith.addf %93, %95 : vector<32x128xf32>
    %cst_42 = arith.constant 0.000000e+00 : f32
    %97 = vector.broadcast %cst_42 : f32 to vector<32x128xf32>
    %98 = arith.maximumf %96, %97 : vector<32x128xf32>
    %c0_43 = arith.constant 0 : index
    %c0_44 = arith.constant 0 : index
    %99 = vector.load %arg9[%c0_43, %c0_44] : memref<16x32xbf16, #tpu.memory_space<vmem>>, vector<16x32xbf16>
    %100 = arith.truncf %98 : vector<32x128xf32> to vector<32x128xbf16>
    %cst_45 = arith.constant dense<0.000000e+00> : vector<16x128xf32>
    %101 = tpu.matmul %99, %100, %cst_45 {dimension_numbers = #tpu.dot_dimension_numbers<[1], [0], [0], [1], [0, 0, 1, 1], [], []>} : vector<16x32xbf16>, vector<32x128xbf16>, vector<16x128xf32> -> vector<16x128xf32>
    %c0_46 = arith.constant 0 : index
    %c0_47 = arith.constant 0 : index
    %102 = vector.load %arg10[%c0_46, %c0_47] : memref<16x1xf32, #tpu.memory_space<vmem>>, vector<16x1xf32>
    %103 = vector.broadcast %102 : vector<16x1xf32> to vector<16x128xf32>
    %104 = arith.addf %101, %103 : vector<16x128xf32>
    %cst_48 = arith.constant 0.000000e+00 : f32
    %105 = vector.broadcast %cst_48 : f32 to vector<16x128xf32>
    %106 = arith.maximumf %104, %105 : vector<16x128xf32>
    %c0_49 = arith.constant 0 : index
    %c0_50 = arith.constant 0 : index
    %c0_51 = arith.constant 0 : index
    %107 = vector.load %arg11[%c0_49, %c0_50, %c0_51] : memref<1x16x128xf32, #tpu.memory_space<vmem>>, vector<1x16x128xf32>
    %108 = vector.shape_cast %107 : vector<1x16x128xf32> to vector<16x128xf32>
    %109 = vector.shape_cast %106 : vector<16x128xf32> to vector<1x16x128xf32>
    tpu.vector_store %arg11[%c0_49, %c0_50, %c0_51], %109 {strides = array<i32>} : memref<1x16x128xf32, #tpu.memory_space<vmem>>, vector<1x16x128xf32>,
    return
  }
  func.func @transform_0(%arg0: i32, %arg1: i32) -> (i32, i32, i32) {
    %c0_i32 = arith.constant 0 : i32
    %c0_i32_0 = arith.constant 0 : i32
    return %arg0, %c0_i32, %arg1 : i32, i32, i32
  }
  func.func @transform_1(%arg0: i32, %arg1: i32) -> (i32, i32, i32) {
    %c0_i32 = arith.constant 0 : i32
    %c0_i32_0 = arith.constant 0 : i32
    %c0_i32_1 = arith.constant 0 : i32
    return %arg0, %c0_i32, %c0_i32_0 : i32, i32, i32
  }
  func.func @transform_2(%arg0: i32, %arg1: i32) -> (i32, i32, i32) {
    %c0_i32 = arith.constant 0 : i32
    %c0_i32_0 = arith.constant 0 : i32
    return %arg0, %c0_i32, %arg1 : i32, i32, i32
  }
  func.func @transform_3(%arg0: i32, %arg1: i32) -> (i32, i32, i32) {
    %c0_i32 = arith.constant 0 : i32
    %c0_i32_0 = arith.constant 0 : i32
    %c0_i32_1 = arith.constant 0 : i32
    return %arg0, %c0_i32, %c0_i32_0 : i32, i32, i32
  }
  func.func @transform_4(%arg0: i32, %arg1: i32) -> (i32, i32) {
    %c0_i32 = arith.constant 0 : i32
    %c0_i32_0 = arith.constant 0 : i32
    %c0_i32_1 = arith.constant 0 : i32
    return %c0_i32, %c0_i32_0 : i32, i32
  }
  func.func @transform_5(%arg0: i32, %arg1: i32) -> (i32, i32) {
    %c0_i32 = arith.constant 0 : i32
    %c0_i32_0 = arith.constant 0 : i32
    %c0_i32_1 = arith.constant 0 : i32
    return %c0_i32, %c0_i32_0 : i32, i32
  }
  func.func @transform_6(%arg0: i32, %arg1: i32) -> (i32, i32) {
    %c0_i32 = arith.constant 0 : i32
    %c0_i32_0 = arith.constant 0 : i32
    %c0_i32_1 = arith.constant 0 : i32
    return %c0_i32, %c0_i32_0 : i32, i32
  }
  func.func @transform_7(%arg0: i32, %arg1: i32) -> (i32, i32) {
    %c0_i32 = arith.constant 0 : i32
    %c0_i32_0 = arith.constant 0 : i32
    %c0_i32_1 = arith.constant 0 : i32
    return %c0_i32, %c0_i32_0 : i32, i32
  }
  func.func @transform_8(%arg0: i32, %arg1: i32) -> (i32, i32) {
    %c0_i32 = arith.constant 0 : i32
    %c0_i32_0 = arith.constant 0 : i32
    %c0_i32_1 = arith.constant 0 : i32
    return %c0_i32, %c0_i32_0 : i32, i32
  }
  func.func @transform_9(%arg0: i32, %arg1: i32) -> (i32, i32, i32) {
    %c0_i32 = arith.constant 0 : i32
    %c0_i32_0 = arith.constant 0 : i32
    return %arg0, %c0_i32, %arg1 : i32, i32, i32
  }
}

</mosaic_0001>

<bundles_post_ra>
// kernel: tpu_custom_call.1
= control target key start
LH: loop header
LB: loop body
LE: loop exit
PB: predicated region body
PF: predicated region fallthrough
CT: control target
= control target key end

     0   :  { %14 = vsyncpa [#allocation3], 0  ;;  %s5134_s0 = inlined_call_operand.vmem [shape: f32[2,3,128], index: 0, kind: input, shape index: {}]   ;;  %s5135_s1 = inlined_call_operand.vmem [shape: f32[2,3,128], index: 1, kind: input, shape index: {}]   ;;  %s5136_s2 = inlined_call_operand.vmem [shape: bf16[2,8,128], index: 2, kind: input, shape index: {}]   ;;  %s5137_s3 = inlined_call_operand.vmem [shape: bf16[2,8,128], index: 3, kind: input, shape index: {}]   ;;  %s5138_s4 = inlined_call_operand.vmem [shape: bf16[32,8], index: 4, kind: input, shape index: {}]   ;;  %s5139_s5 = inlined_call_operand.vmem [shape: bf16[32,8], index: 5, kind: input, shape index: {}]   ;;  %s5140_s6 = inlined_call_operand.vmem [shape: f32[32,1], index: 6, kind: input, shape index: {}]   ;;  %s5141_s7 = inlined_call_operand.vmem [shape: bf16[16,32], index: 7, kind: input, shape index: {}]   ;;  %s5142_s8 = inlined_call_operand.vmem [shape: f32[16,1], index: 8, kind: input, shape index: {}]   ;;  %s5143_s9 = inlined_call_operand.hbm [shape: f32[2,16,128], index: 9, kind: output, shape index: {}]  }
   0x1   :  { %16 = vsyncpa [#allocation3 + $0x1], 0  ;;  %s3224_s30 = smov 0   ;;  %s3226_s10 = smov 0  }
   0x2   :  { %s3228_s11 = smov 0   ;;  %s3230_s12 = smov 0  }
   0x3   :  { %s3232_s13 = smov 0   ;;  %s3234_s14 = smov 0  }
   0x4 LB: > { %s2646_s15 = sadd.s32 4294967295, %s3166_s14   ;;  %s2647_s16 = sadd.s32 4294967294, %s3166_s14   ;;  %s3166_s14 = sphi %s3234_s14, %s22_s14   ;;  %s3162_s13 = sphi %s3232_s13, %s5310_s13   ;;  %s3158_s12 = sphi %s3230_s12, %s5309_s12   ;;  %s3154_s11 = sphi %s3228_s11, %s5308_s11   ;;  %s3150_s10 = sphi %s3226_s10, %s5307_s10   ;;  %s3146_s30 = sphi %s3224_s30, %s5306_s30  }
   0x5   : > { %s34_s17 = sadd.s32 1, %s3162_s13  ;;  %s256_s18 = sadd.s32 1, %s3154_s11 }
   0x6   : > { %p36_p0 = scmp.ge.s32.totalorder %s34_s17, 2  ;;  %p266_p1 = scmp.ne.s32.totalorder %s3154_s11, %s3150_s10 }
   0x7   : > { %p267_p2 = scmp.eq.s32.totalorder %s2646_s15, 1  ;;  %p272_p3 = scmp.ne.s32.totalorder %s3150_s10, %s3146_s30 }
   0x8   : > { %s5312_s17 = smov (%p36_p0, %s34_s17), 0  ;;  %p273_p5 = scmp.eq.s32.totalorder %s2647_s16, 1 }
   0x9   : > { %p3264_p4 = por %p267_p2, %p266_p1  ;;  %s251_s20 = ssub.s32 %s3162_s13, %s5312_s17 }
   0xa   : > { %p2650_p6 = scmp.ge.s32.totalorder %s3166_s14, 1  ;;  %p254_p7 = scmp.eq.s32.totalorder %s251_s20, 0 }
   0xb   : > { %p3271_p8 = por %p273_p5, %p272_p3  ;;  %p340_p9 = scmp.lt.s32.totalorder %s3166_s14, 3 }
   0xc   : > { %s3277_s22 = scalar_select %p254_p7, %s3154_s11, %s256_s18  }
   0xd   : > { %p341_p10 = pnand %p2650_p6, %p340_p9 }
   0xf   : > { %344 = sbr.rel (%p341_p10) target bundleno = 1876 (0x754), region = 56 }
  0x16   : > { %p393_p11 = scmp.lt.s32.totalorder %s3158_s12, 1  ;;  %vm421_vm0 = vcmask 1042432   ;;  %vm439_vm1 = vcmask 1043456   ;;  %vm524_vm2 = vcmask 1044480   ;;  %vm475_vm3 = vcmask 39936   ;;  %s2688_s16 = sshll.u32 %s3158_s12, 8 }
  0x17   : > { %v689_v39 = vlaneseq }
  0x18   : > { %s394_s23 = scalar_select %p393_p11, %s3158_s12, 1 }
  0x19   : > { %v3313_v42 = vand.u32 127, %v689_v39  ;;  %s3171_s12 = smov [#allocation2]  }
  0x1a   : > { %s3281_s24 = sshll.u32 %s394_s23, 2  ;;  %s5086_s23 = scalar_lea.hbm %s5143_s9, %s2688_s16 }
  0x1b   : > { %s399_s27 = scalar_lea.vmem %s5134_s0, %s3281_s24  ;;  %s403_s15 = scalar_lea.vmem %s5135_s1, %s3281_s24 }
  0x1c   : > { %v416_v0 = vld [vmem:[%s399_s27] sm:$0x7]  ;;  %s414_s20 = scalar_lea.vmem %s5137_s3, %s3281_s24  ;;  %s390_s27 = sand.u32 1, %s3150_s10  }
  0x1d   : > { %v420_v1 = vmul.f32 %v416_v0, %v416_v0  ;;  %v417_v4 = vld [vmem:[%s403_s15] sm:$0x7]  ;;  %v437_v13 = vmul.f32 -2.0, %v416_v0  ;;  %s410_s15 = scalar_lea.vmem %s5136_s2, %s3281_s24  ;;  %s2651_s28 = sshll.u32 %s390_s27, 4 }
  0x1e   : > { %v429_v5 = vmul.f32 %v417_v4, %v417_v4  ;;  %v441_v21 = vsel %vm421_vm0, %v417_v4, 1.0  ;;  %s392_s29 = scalar_lea.vmem [#allocation2], %s2651_s28  ;;  %s5088_s24 = scalar_lea.sflag [#allocation3], %s390_s27 }
  0x1f   : > { %v422_v2 = vsel %vm421_vm0, %v420_v1, 0.0  ;;  %s3092_s26 = sshll.u32 %s3171_s12, 4  ;;  %s3093_s26 = int_to_ptr.vmem [resolvable:$false] %s3092_s26 }
  0x20   : > { %v423_v3 = vrot.slane %v422_v2, 4  ;;  %v430_v7 = vsel %vm421_vm0, %v429_v5, 0.0  ;;  %s3094_s28 = scalar_lea.vmem %s3093_s26, 512 }
  0x21   : > { %v431_v9 = vrot.slane %v430_v7, 4 }
  0x22   : > { %v424_v6 = vadd.f32 %v423_v3, %v422_v2 }
  0x23   : > { %v432_v11 = vadd.f32 %v431_v9, %v430_v7 }
  0x24   : > { %v425_v8 = vrot.slane %v424_v6, 2 }
  0x25   : > { %v433_v14 = vrot.slane %v432_v11, 2 }
  0x26   : > { %v426_v10 = vadd.f32 %v425_v8, %v424_v6 }
  0x27   : > { %v434_v16 = vadd.f32 %v433_v14, %v432_v11 }
  0x28   : > { %v427_v12 = vrot.slane %v426_v10, 1 }
  0x29   : > { %v435_v18 = vrot.slane %v434_v16, 1 }
  0x2a   : > { %v428_v15 = vadd.f32 %v427_v12, %v426_v10 }
  0x2b   : > { %v436_v20 = vadd.f32 %v435_v18, %v434_v16 }
  0x2c   : > { %v438_v17 = vsel %vm421_vm0, %v437_v13, %v428_v15 }
  0x2d   : > { %v440_v19 = vsel %vm439_vm1, %v438_v17, 1.0  ;;  %v442_v22 = vsel %vm439_vm1, %v441_v21, %v436_v20 }
  0x2e   : > { %443 = vxpose.xlu0.b32.start.end [1/1] (short) %v440_v19, 128  ;;  %2725 = vmatprep.subr.msk.mxu0 %vm524_vm2, %v442_v22 }
  0x2f   : > { %2726 = vmatpush3.msk.msra.mxu0 %vm524_vm2, %v442_v22 }
  0xae   : > { %v459_v23 = vpop.trf.xlu0 }
  0xaf   : > { %2727 = vmatprep.mubr.msk.f32.mxu0 %vm475_vm3, %v459_v23 }
  0xb2   : > { %v460_v24 = vpop.trf.xlu0 }
  0xb3   : > { %2728 = vmatmul.mubr.msk.f32.vlgmr.msra.gmra.mrb[0].mxu0 %vm475_vm3, %v460_v24 }
  0xb6   : > { %v461_v25 = vpop.trf.xlu0 }
  0xb7   : > { %2730 = vmatprep.mubr.msk.f32.mxu0 %vm475_vm3, %v461_v25 }
  0xba   : > { %v462_v26 = vpop.trf.xlu0 }
  0xbb   : > { %2731 = vmatmul.mubr.msk.f32.gmra.mrb[2].mxu0 %vm475_vm3, %v462_v26 }
  0xbe   : > { %v463_v27 = vpop.trf.xlu0 }
  0xbf   : > { %2733 = vmatprep.mubr.msk.f32.mxu0 %vm475_vm3, %v463_v27 }
  0xc2   : > { %v464_v28 = vpop.trf.xlu0 }
  0xc3   : > { %2734 = vmatmul.mubr.msk.f32.gmra.mrb[4].mxu0 %vm475_vm3, %v464_v28 }
  0xc6   : > { %v465_v29 = vpop.trf.xlu0 }
  0xc7   : > { %2736 = vmatprep.mubr.msk.f32.mxu0 %vm475_vm3, %v465_v29 }
  0xca   : > { %v466_v30 = vpop.trf.xlu0 }
  0xcb   : > { %2737 = vmatmul.mubr.msk.f32.gmra.mrb[6].mxu0 %vm475_vm3, %v466_v30 }
  0xce   : > { %v467_v31 = vpop.trf.xlu0 }
  0xcf   : > { %2739 = vmatprep.mubr.msk.f32.mxu0 %vm475_vm3, %v467_v31 }
  0xd2   : > { %v468_v32 = vpop.trf.xlu0 }
  0xd3   : > { %2740 = vmatmul.mubr.msk.f32.gmra.mrb[8].mxu0 %vm475_vm3, %v468_v32 }
  0xd6   : > { %v469_v33 = vpop.trf.xlu0 }
  0xd7   : > { %2742 = vmatprep.mubr.msk.f32.mxu0 %vm475_vm3, %v469_v33 }
  0xda   : > { %v470_v34 = vpop.trf.xlu0 }
  0xdb   : > { %2743 = vmatmul.mubr.msk.f32.gmra.mrb[10].mxu0 %vm475_vm3, %v470_v34 }
  0xde   : > { %v471_v35 = vpop.trf.xlu0 }
  0xdf   : > { %2745 = vmatprep.mubr.msk.f32.mxu0 %vm475_vm3, %v471_v35 }
  0xe2   : > { %v472_v36 = vpop.trf.xlu0 }
  0xe3   : > { %2746 = vmatmul.mubr.msk.f32.gmra.mrb[12].mxu0 %vm475_vm3, %v472_v36 }
  0xe6   : > { %v473_v37 = vpop.trf.xlu0 }
  0xe7   : > { %2748 = vmatprep.mubr.msk.f32.mxu0 %vm475_vm3, %v473_v37 }
  0xea   : > { %v474_v38 = vpop.trf.xlu0 }
  0xeb   : > { %2749 = vmatmul.mubr.msk.f32.gmra.mrb[14].mxu0 %vm475_vm3, %v474_v38 }
 0x186   : > { %v2729_v40 = vpop.f32.mrb[0].mxu0 }
 0x187   : > { %v674_v41 = vmax.f32 %v2729_v40, 0.0  ;;  %v594_v43 = vpop.f32.mrb[1].mxu0 }
 0x188   : > { %v673_v44 = vmax.f32 %v594_v43, 0.0 }
 0x189   : > { %v708_v45 = vand.u32 4294967168, %v674_v41 }
 0x18a   : > { %v707_v46 = vand.u32 4294967168, %v673_v44 }
 0x18b   : > { %v3316_v47 = vor.u32 %v708_v45, %v3313_v42 }
 0x18c   : > { %v3319_v48 = vor.u32 %v707_v46, %v3313_v42 }
 0x18d   : > { %v754_v49 = vshra.s32 %v3316_v47, 16 }
 0x18e   : > { %v2732_v50 = vpop.f32.mrb[2].mxu0  ;;  %v740_v51 = vshra.s32 %v3319_v48, 16 }
 0x18f   : > { %v676_v52 = vmax.f32 %v2732_v50, 0.0  ;;  %v604_v53 = vpop.f32.mrb[3].mxu0  ;;  %v3323_v54 = vcvt.s32.f32 %v754_v49 }
 0x190   : > { %v675_v55 = vmax.f32 %v604_v53, 0.0  ;;  %v3325_v56 = vcvt.s32.f32 %v740_v51 }
 0x191   : > { %v710_v57 = vand.u32 4294967168, %v676_v52  ;;  %757 = vmin.xlane.f32.xlu1 %v3323_v54 }
 0x192   : > { %v709_v58 = vand.u32 4294967168, %v675_v55  ;;  %743 = vmin.xlane.f32.xlu0 %v3325_v56 }
 0x193   : > { %v3330_v59 = vor.u32 %v710_v57, %v3313_v42 }
 0x194   : > { %v3333_v60 = vor.u32 %v709_v58, %v3313_v42 }
 0x195   : > { %v782_v61 = vshra.s32 %v3330_v59, 16 }
 0x196   : > { %v2735_v62 = vpop.f32.mrb[4].mxu0  ;;  %v768_v2 = vshra.s32 %v3333_v60, 16 }
 0x197   : > { %v678_v63 = vmax.f32 %v2735_v62, 0.0  ;;  %v614_v0 = vpop.f32.mrb[5].mxu0  ;;  %v3336_v1 = vcvt.s32.f32 %v782_v61 }
 0x198   : > { %v677_v3 = vmax.f32 %v614_v0, 0.0  ;;  %v3343_v7 = vcvt.s32.f32 %v768_v2 }
 0x199   : > { %v712_v4 = vand.u32 4294967168, %v678_v63  ;;  %785 = vmin.xlane.f32.xlu1 %v3336_v1 }
 0x19a   : > { %v711_v5 = vand.u32 4294967168, %v677_v3 }
 0x19b   : > { %v3341_v6 = vor.u32 %v712_v4, %v3313_v42 }
 0x19c   : > { %v3346_v8 = vor.u32 %v711_v5, %v3313_v42 }
 0x19d   : > { %771 = vmin.xlane.f32.xlu1 %v3343_v7  ;;  %v810_v9 = vshra.s32 %v3341_v6, 16 }
 0x19e   : > { %v2738_v10 = vpop.f32.mrb[6].mxu0  ;;  %v796_v14 = vshra.s32 %v3346_v8, 16 }
 0x19f   : > { %v680_v11 = vmax.f32 %v2738_v10, 0.0  ;;  %v624_v12 = vpop.f32.mrb[7].mxu0  ;;  %v3350_v13 = vcvt.s32.f32 %v810_v9 }
 0x1a0   : > { %v679_v15 = vmax.f32 %v624_v12, 0.0  ;;  %v3357_v19 = vcvt.s32.f32 %v796_v14 }
 0x1a1   : > { %v714_v16 = vand.u32 4294967168, %v680_v11  ;;  %813 = vmin.xlane.f32.xlu1 %v3350_v13 }
 0x1a2   : > { %v713_v17 = vand.u32 4294967168, %v679_v15 }
 0x1a3   : > { %v3355_v18 = vor.u32 %v714_v16, %v3313_v42 }
 0x1a4   : > { %v3360_v20 = vor.u32 %v713_v17, %v3313_v42 }
 0x1a5   : > { %799 = vmin.xlane.f32.xlu1 %v3357_v19  ;;  %v838_v21 = vshra.s32 %v3355_v18, 16 }
 0x1a6   : > { %v2741_v22 = vpop.f32.mrb[8].mxu0  ;;  %v824_v26 = vshra.s32 %v3360_v20, 16 }
 0x1a7   : > { %v682_v23 = vmax.f32 %v2741_v22, 0.0  ;;  %v634_v24 = vpop.f32.mrb[9].mxu0  ;;  %v3364_v25 = vcvt.s32.f32 %v838_v21 }
 0x1a8   : > { %v681_v27 = vmax.f32 %v634_v24, 0.0  ;;  %v3371_v31 = vcvt.s32.f32 %v824_v26  ;;  %v753_v24 = vand.u32 65535, %v3316_v47 }
 0x1a9   : > { %v716_v28 = vand.u32 4294967168, %v682_v23  ;;  %841 = vmin.xlane.f32.xlu1 %v3364_v25 }
 0x1aa   : > { %v715_v29 = vand.u32 4294967168, %v681_v27  ;;  %v739_v27 = vand.u32 65535, %v3319_v48 }
 0x1ab   : > { %v3369_v30 = vor.u32 %v716_v28, %v3313_v42 }
 0x1ac   : > { %v3374_v32 = vor.u32 %v715_v29, %v3313_v42 }
 0x1ad   : > { %827 = vmin.xlane.f32.xlu1 %v3371_v31  ;;  %v866_v33 = vshra.s32 %v3369_v30, 16 }
 0x1ae   : > { %v2744_v34 = vpop.f32.mrb[10].mxu0  ;;  %v852_v38 = vshra.s32 %v3374_v32, 16 }
 0x1af   : > { %v684_v35 = vmax.f32 %v2744_v34, 0.0  ;;  %v644_v36 = vpop.f32.mrb[11].mxu0  ;;  %v3378_v37 = vcvt.s32.f32 %v866_v33  ;;  %v741_v33 = vcvt.s32.f32 %v739_v27  ;;  %v781_v34 = vand.u32 65535, %v3330_v59 }
 0x1b0   : > { %v683_v39 = vmax.f32 %v644_v36, 0.0  ;;  %v3385_v44 = vcvt.s32.f32 %v852_v38 }
 0x1b1   : > { %v718_v40 = vand.u32 4294967168, %v684_v35  ;;  %869 = vmin.xlane.f32.xlu1 %v3378_v37  ;;  %v783_v38 = vcvt.s32.f32 %v781_v34 }
 0x1b2   : > { %v717_v41 = vand.u32 4294967168, %v683_v39  ;;  %v767_v39 = vand.u32 65535, %v3333_v60 }
 0x1b3   : > { %v3383_v43 = vor.u32 %v718_v40, %v3313_v42 }
 0x1b4   : > { %v3388_v45 = vor.u32 %v717_v41, %v3313_v42  ;;  %v769_v41 = vcvt.s32.f32 %v767_v39 }
 0x1b5   : > { %855 = vmin.xlane.f32.xlu1 %v3385_v44  ;;  %v894_v46 = vshra.s32 %v3383_v43, 16 }
 0x1b6   : > { %v2747_v49 = vpop.f32.mrb[12].mxu0  ;;  %v880_v53 = vshra.s32 %v3388_v45, 16 }
 0x1b7   : > { %v686_v50 = vmax.f32 %v2747_v49, 0.0  ;;  %v3392_v51 = vcvt.s32.f32 %v894_v46  ;;  %v654_v52 = vpop.f32.mrb[13].mxu0 }
 0x1b8   : > { %v685_v55 = vmax.f32 %v654_v52, 0.0  ;;  %v3399_v62 = vcvt.s32.f32 %v880_v53  ;;  %v795_v52 = vand.u32 65535, %v3346_v8 }
 0x1b9   : > { %v720_v57 = vand.u32 4294967168, %v686_v50  ;;  %897 = vmin.xlane.f32.xlu1 %v3392_v51 }
 0x1ba   : > { %v719_v58 = vand.u32 4294967168, %v685_v55  ;;  %v797_v55 = vcvt.s32.f32 %v795_v52 }
 0x1bb   : > { %v3397_v61 = vor.u32 %v720_v57, %v3313_v42  ;;  %v837_v57 = vand.u32 65535, %v3355_v18 }
 0x1bc   : > { %v3402_v63 = vor.u32 %v719_v58, %v3313_v42 }
 0x1bd   : > { %883 = vmin.xlane.f32.xlu1 %v3399_v62  ;;  %v922_v0 = vshra.s32 %v3397_v61, 16 }
 0x1be   : > { %v2750_v2 = vpop.f32.mrb[14].mxu0  ;;  %v908_v3 = vshra.s32 %v3402_v63, 16  ;;  %v907_v39 = vand.u32 65535, %v3402_v63 }
 0x1bf   : > { %v688_v4 = vmax.f32 %v2750_v2, 0.0  ;;  %v664_v5 = vpop.f32.mrb[15].mxu0  ;;  %v3407_v9 = vcvt.s32.f32 %v922_v0  ;;  %v839_v0 = vcvt.s32.f32 %v837_v57  ;;  %v823_v2 = vand.u32 65535, %v3360_v20 }
 0x1c0   : > { %v687_v10 = vmax.f32 %v664_v5, 0.0  ;;  %v3410_v12 = vcvt.s32.f32 %v908_v3  ;;  %v865_v5 = vand.u32 65535, %v3369_v30 }
 0x1c1   : > { %v722_v11 = vand.u32 4294967168, %v688_v4  ;;  %925 = vmin.xlane.f32.xlu1 %v3407_v9  ;;  %v825_v4 = vcvt.s32.f32 %v823_v2 }
 0x1c2   : > { %v721_v14 = vand.u32 4294967168, %v687_v10 }
 0x1c3   : > { %v3413_v15 = vor.u32 %v722_v11, %v3313_v42  ;;  %v867_v11 = vcvt.s32.f32 %v865_v5 }
 0x1c4   : > { %v3416_v16 = vor.u32 %v721_v14, %v3313_v42  ;;  %v755_v42 = vcvt.s32.f32 %v753_v24  ;;  %v851_v14 = vand.u32 65535, %v3374_v32 }
 0x1c5   : > { %911 = vmin.xlane.f32.xlu1 %v3410_v12  ;;  %v950_v22 = vshra.s32 %v3413_v15, 16 }
 0x1c6   : > { %v936_v17 = vshra.s32 %v3416_v16, 16 }
 0x1c7   : > { %v3424_v23 = vcvt.s32.f32 %v950_v22  ;;  %v853_v22 = vcvt.s32.f32 %v851_v14 }
 0x1c8   : > { %v3420_v21 = vcvt.s32.f32 %v936_v17 }
 0x1ca   : > { %939 = vmin.xlane.f32.xlu1 %v3420_v21 }
 0x1ce   : > { %953 = vmin.xlane.f32.xlu1 %v3424_v23 }
 0x21e   : > { %v3428_v26 = vpop.xlane.xlu1 %757 }
 0x21f   : > { %v3431_v28 = vpop.xlane.xlu0 %743  ;;  %vm759_vm4 = vcmp.eq.f32.partialorder %v3323_v54, %v3428_v26 }
 0x220   : > { %v760_v29 = vsel %vm759_vm4, %v755_v42, inf  ;;  %vm745_vm5 = vcmp.eq.f32.partialorder %v3325_v56, %v3431_v28  ;;  %v809_v56 = vand.u32 65535, %v3341_v6  ;;  %v879_v42 = vand.u32 65535, %v3388_v45 }
 0x221   : > { %761 = vmin.xlane.f32.xlu1 %v760_v29  ;;  %v746_v35 = vsel %vm745_vm5, %v741_v33, inf  ;;  %v921_v33 = vand.u32 65535, %v3397_v61 }
 0x222   : > { %v811_v50 = vcvt.s32.f32 %v809_v56  ;;  %v881_v29 = vcvt.s32.f32 %v879_v42 }
 0x225   : > { %747 = vmin.xlane.f32.xlu1 %v746_v35  ;;  %v923_v35 = vcvt.s32.f32 %v921_v33 }
 0x226   : > { %v3438_v36 = vpop.xlane.xlu1 %785 }
 0x227   : > { %vm787_vm6 = vcmp.eq.f32.partialorder %v3336_v1, %v3438_v36 }
 0x228   : > { %v788_v40 = vsel %vm787_vm6, %v783_v38, inf }
 0x229   : > { %789 = vmin.xlane.f32.xlu1 %v788_v40 }
 0x22a   : > { %v3443_v54 = vpop.xlane.xlu1 %771 }
 0x22b   : > { %vm773_vm7 = vcmp.eq.f32.partialorder %v3343_v7, %v3443_v54 }
 0x22c   : > { %v774_v46 = vsel %vm773_vm7, %v769_v41, inf }
 0x22d   : > { %775 = vmin.xlane.f32.xlu1 %v774_v46 }
 0x22e   : > { %v3448_v49 = vpop.xlane.xlu1 %813 }
 0x22f   : > { %vm815_vm8 = vcmp.eq.f32.partialorder %v3350_v13, %v3448_v49 }
 0x230   : > { %v816_v1 = vsel %vm815_vm8, %v811_v50, inf }
 0x231   : > { %817 = vmin.xlane.f32.xlu1 %v816_v1  ;;  %v949_v1 = vand.u32 65535, %v3413_v15 }
 0x232   : > { %v3453_v53 = vpop.xlane.xlu1 %799 }
 0x233   : > { %vm801_vm9 = vcmp.eq.f32.partialorder %v3357_v19, %v3453_v53  ;;  %v951_v57 = vcvt.s32.f32 %v949_v1 }
 0x234   : > { %v802_v7 = vsel %vm801_vm9, %v797_v55, inf }
 0x235   : > { %803 = vmin.xlane.f32.xlu1 %v802_v7  ;;  %v764_v7 = vcvt.f32.s32 %v3428_v26 }
 0x236   : > { %v3458_v58 = vpop.xlane.xlu1 %841 }
 0x237   : > { %vm843_vm10 = vcmp.eq.f32.partialorder %v3364_v25, %v3458_v58  ;;  %v765_v2 = vshll.u32 %v764_v7, 16 }
 0x238   : > { %v844_v13 = vsel %vm843_vm10, %v839_v0, inf }
 0x239   : > { %845 = vmin.xlane.f32.xlu1 %v844_v13 }
 0x23a   : > { %v3463_v3 = vpop.xlane.xlu1 %827 }
 0x23b   : > { %vm829_vm11 = vcmp.eq.f32.partialorder %v3371_v31, %v3463_v3 }
 0x23c   : > { %v830_v19 = vsel %vm829_vm11, %v825_v4, inf  ;;  %v750_v4 = vcvt.f32.s32 %v3431_v28 }
 0x23d   : > { %831 = vmin.xlane.f32.xlu1 %v830_v19  ;;  %v792_v19 = vcvt.f32.s32 %v3438_v36 }
 0x23e   : > { %v3468_v10 = vpop.xlane.xlu1 %869  ;;  %v751_v14 = vshll.u32 %v750_v4, 16 }
 0x23f   : > { %vm871_vm12 = vcmp.eq.f32.partialorder %v3378_v37, %v3468_v10  ;;  %v893_v37 = vand.u32 65535, %v3383_v43  ;;  %v793_v36 = vshll.u32 %v792_v19, 16 }
 0x240   : > { %v872_v25 = vsel %vm871_vm12, %v867_v11, inf }
 0x241   : > { %873 = vmin.xlane.f32.xlu1 %v872_v25  ;;  %v895_v38 = vcvt.s32.f32 %v893_v37 }
 0x242   : > { %v3473_v17 = vpop.xlane.xlu1 %855 }
 0x243   : > { %vm857_vm13 = vcmp.eq.f32.partialorder %v3385_v44, %v3473_v17 }
 0x244   : > { %v858_v24 = vsel %vm857_vm13, %v853_v22, inf }
 0x245   : > { %859 = vmin.xlane.f32.xlu1 %v858_v24  ;;  %v778_v24 = vcvt.f32.s32 %v3443_v54 }
 0x246   : > { %v3477_v31 = vpop.xlane.xlu1 %897 }
 0x247   : > { %vm899_vm15 = vcmp.eq.f32.partialorder %v3392_v51, %v3477_v31  ;;  %v935_v51 = vand.u32 65535, %v3416_v16 }
 0x248   : > { %v900_v41 = vsel %vm899_vm15, %v895_v38, inf }
 0x249   : > { %v937_v52 = vcvt.s32.f32 %v935_v51 }
 0x24a   : > { %v3480_v27 = vpop.xlane.xlu1 %883 }
 0x24b   : > { %vm885_vm14 = vcmp.eq.f32.partialorder %v3399_v62, %v3480_v27  ;;  %v909_v62 = vcvt.s32.f32 %v907_v39  ;;  %v876_v39 = vcvt.f32.s32 %v3468_v10 }
 0x24c   : > { %v886_v34 = vsel %vm885_vm14, %v881_v29, inf  ;;  %v820_v29 = vcvt.f32.s32 %v3448_v49  ;;  %v834_v49 = vcvt.f32.s32 %v3463_v3 }
 0x24d   : > { %887 = vmin.xlane.f32.xlu1 %v886_v34  ;;  %v806_v34 = vcvt.f32.s32 %v3453_v53 }
 0x24e   : > { %v3488_v44 = vpop.xlane.xlu1 %925  ;;  %v821_v10 = vshll.u32 %v820_v29, 16 }
 0x24f   : > { %vm927_vm0 = vcmp.eq.f32.partialorder %v3407_v9, %v3488_v44  ;;  %v807_v51 = vshll.u32 %v806_v34, 16 }
 0x250   : > { %v928_v40 = vsel %vm927_vm0, %v923_v35, inf  ;;  %v848_v35 = vcvt.f32.s32 %v3458_v58 }
 0x251   : > { %929 = vmin.xlane.f32.xlu0 %v928_v40  ;;  %901 = vmin.xlane.f32.xlu1 %v900_v41 }
 0x252   : > { %v3493_v56 = vpop.xlane.xlu1 %911 }
 0x253   : > { %vm913_vm2 = vcmp.eq.f32.partialorder %v3410_v12, %v3493_v56 }
 0x254   : > { %v914_v46 = vsel %vm913_vm2, %v909_v62, inf  ;;  %v779_v62 = vshll.u32 %v778_v24, 16 }
 0x255   : > { %915 = vmin.xlane.f32.xlu1 %v914_v46  ;;  %v849_v46 = vshll.u32 %v848_v35, 16 }
 0x257   : > { %v3498_v50 = vpop.xlane.xlu1 %939 }
 0x258   : > { %vm941_vm3 = vcmp.eq.f32.partialorder %v3420_v21, %v3498_v50 }
 0x259   : > { %v942_v9 = vsel %vm941_vm3, %v937_v52, inf  ;;  %v862_v52 = vcvt.f32.s32 %v3473_v17 }
 0x25a   : > { %943 = vmin.xlane.f32.xlu1 %v942_v9 }
 0x25b   : > { %v3503_v55 = vpop.xlane.xlu1 %953 }
 0x25c   : > { %vm955_vm4 = vcmp.eq.f32.partialorder %v3424_v23, %v3503_v55 }
 0x25d   : > { %v956_v12 = vsel %vm955_vm4, %v951_v57, inf }
 0x25e   : > { %957 = vmin.xlane.f32.xlu0 %v956_v12 }
 0x2ae   : > { %v762_v0 = vpop.xlane.xlu1 %761 }
 0x2af   : > { %v763_v13 = vcvt.f32.s32 %v762_v0  ;;  %v3566_v0 = vshll.u32 %v834_v49, 16 }
 0x2b1   : > { %v3509_v5 = vadd.s32 %v765_v2, %v763_v13  ;;  %v3568_v2 = vshll.u32 %v876_v39, 16  ;;  %v904_v13 = vcvt.f32.s32 %v3477_v31 }
 0x2b2   : > { %v748_v21 = vpop.xlane.xlu1 %747 }
 0x2b3   : > { %vm964_vm5 = vcmp.eq.s32.totalorder %v3316_v47, %v3509_v5  ;;  %v980_v11 = vand.u32 4294967168, %v3509_v5  ;;  %v749_v23 = vcvt.f32.s32 %v748_v21  ;;  %v3591_v24 = vshll.u32 %v904_v13, 16 }
 0x2b4   : > { %v3519_v26 = vsel %vm964_vm5, 2147483647, %v3316_v47 }
 0x2b5   : > { %2864 = vrsqrt.f32 %v980_v11  ;;  %v3521_v28 = vadd.s32 %v751_v14, %v749_v23  ;;  %v1234_v22 = vshra.s32 %v3519_v26, 16  ;;  %vm1020_vm9 = vcmp.eq.f32.partialorder %v980_v11, inf }
 0x2b6   : > { %v790_v25 = vpop.xlane.xlu1 %789  ;;  %v1023_v23 = vand.u32 2147483648, %v980_v11  ;;  %vm1022_vm10 = vcmp.eq.f32.partialorder %v980_v11, 0.0 }
 0x2b7   : > { %v791_v42 = vcvt.f32.s32 %v790_v25  ;;  %vm963_vm6 = vcmp.eq.s32.totalorder %v3319_v48, %v3521_v28  ;;  %v3529_v33 = vand.u32 4294967168, %v3521_v28  ;;  %v3531_v37 = vcvt.s32.f32 %v1234_v22 }
 0x2b8   : > { %v3541_v54 = vsel %vm963_vm6, 2147483647, %v3319_v48  ;;  %v3587_v25 = vshll.u32 %v862_v52, 16  ;;  %v932_v48 = vcvt.f32.s32 %v3488_v44 }
 0x2b9   : > { %v3535_v38 = vadd.s32 %v793_v36, %v791_v42  ;;  %2866 = vrsqrt.f32 %v3529_v33  ;;  %1237 = vmin.xlane.f32.xlu0 %v3531_v37  ;;  %v1220_v41 = vshra.s32 %v3541_v54, 16  ;;  %vm1013_vm12 = vcmp.eq.f32.partialorder %v3529_v33, inf }
 0x2ba   : > { %v776_v40 = vpop.xlane.xlu1 %775  ;;  %vm1015_vm13 = vcmp.eq.f32.partialorder %v3529_v33, 0.0 }
 0x2bb   : > { %vm966_vm7 = vcmp.eq.s32.totalorder %v3330_v59, %v3535_v38  ;;  %v3550_v53 = vand.u32 4294967168, %v3535_v38  ;;  %v777_v58 = vcvt.f32.s32 %v776_v40  ;;  %v3563_v9 = vcvt.s32.f32 %v1220_v41 }
 0x2bc   : > { %v3557_v3 = vsel %vm966_vm7, 2147483647, %v3330_v59 }
 0x2bd   : > { %2868 = vrsqrt.f32 %v3550_v53  ;;  %v3561_v1 = vadd.s32 %v779_v62, %v777_v58  ;;  %v1262_v12 = vshra.s32 %v3557_v3, 16  ;;  %1223 = vmin.xlane.f32.xlu1 %v3563_v9  ;;  %v1016_v58 = vand.u32 2147483648, %v3529_v33 }
 0x2be   : > { %v818_v57 = vpop.xlane.xlu1 %817  ;;  %vm1034_vm14 = vcmp.eq.f32.partialorder %v3550_v53, inf  ;;  %vm1036_vm0 = vcmp.eq.f32.partialorder %v3550_v53, 0.0 }
 0x2bf   : > { %v2865_v7 = vpop.eup %2864  ;;  %v819_v4 = vcvt.f32.s32 %v818_v57  ;;  %vm965_vm8 = vcmp.eq.s32.totalorder %v3333_v60, %v3561_v1  ;;  %v3574_v17 = vand.u32 4294967168, %v3561_v1  ;;  %v3577_v19 = vcvt.s32.f32 %v1262_v12 }
 0x2c0   : > { %v1019_v21 = vmul.f32 %v2865_v7, %v980_v11  ;;  %v3583_v14 = vsel %vm965_vm8, 2147483647, %v3333_v60 }
 0x2c1   : > { %v3585_v31 = vadd.s32 %v821_v10, %v819_v4  ;;  %2870 = vrsqrt.f32 %v3574_v17  ;;  %1265 = vmin.xlane.f32.xlu0 %v3577_v19  ;;  %v1248_v39 = vshra.s32 %v3583_v14, 16  ;;  %vm1027_vm2 = vcmp.eq.f32.partialorder %v3574_v17, inf }
 0x2c2   : > { %v1021_v22 = vsel %vm1020_vm9, %v980_v11, %v1019_v21  ;;  %v804_v36 = vpop.xlane.xlu1 %803  ;;  %vm1029_vm4 = vcmp.eq.f32.partialorder %v3574_v17, 0.0 }
 0x2c3   : > { %v1024_v42 = vsel %vm1022_vm10, %v1023_v23, %v1021_v22  ;;  %vm968_vm11 = vcmp.eq.s32.totalorder %v3341_v6, %v3585_v31  ;;  %v3596_v29 = vand.u32 4294967168, %v3585_v31  ;;  %v2867_v34 = vpop.eup %2866  ;;  %v805_v49 = vcvt.f32.s32 %v804_v36 }
 0x2c4   : > { %v1124_v35 = vmax.f32 %v1024_v42, 1e-10  ;;  %v3602_v11 = vsel %vm968_vm11, 2147483647, %v3341_v6  ;;  %v1012_v40 = vmul.f32 %v2867_v34, %v3529_v33  ;;  %v3612_v62 = vcvt.s32.f32 %v1248_v39 }
 0x2c5   : > { %2872 = vrsqrt.f32 %v3596_v29  ;;  %v3610_v41 = vadd.s32 %v807_v51, %v805_v49  ;;  %v1290_v7 = vshra.s32 %v3602_v11, 16  ;;  %v1037_v23 = vand.u32 2147483648, %v3550_v53 }
 0x2c6   : > { %2874 = vrcp.f32 %v1124_v35  ;;  %v846_v10 = vpop.xlane.xlu1 %845  ;;  %v1014_v57 = vsel %vm1013_vm12, %v3529_v33, %v1012_v40  ;;  %1251 = vmin.xlane.f32.xlu1 %v3612_v62  ;;  %vm1048_vm9 = vcmp.eq.f32.partialorder %v3596_v29, inf  ;;  %vm1050_vm12 = vcmp.eq.f32.partialorder %v3596_v29, 0.0 }
 0x2c7   : > { %v2869_v52 = vpop.eup %2868  ;;  %v847_v12 = vcvt.f32.s32 %v846_v10  ;;  %v1017_v13 = vsel %vm1015_vm13, %v1016_v58, %v1014_v57  ;;  %vm967_vm15 = vcmp.eq.s32.totalorder %v3346_v8, %v3610_v41  ;;  %v3621_v51 = vand.u32 4294967168, %v3610_v41 }
 0x2c8   : > { %v1033_v4 = vmul.f32 %v2869_v52, %v3550_v53  ;;  %v1123_v21 = vmax.f32 %v1017_v13, 1e-10  ;;  %v3627_v22 = vcvt.s32.f32 %v1290_v7  ;;  %v3636_v42 = vsel %vm967_vm15, 2147483647, %v3346_v8 }
 0x2c9   : > { %v3625_v33 = vadd.s32 %v849_v46, %v847_v12  ;;  %2876 = vrsqrt.f32 %v3621_v51  ;;  %v1276_v10 = vshra.s32 %v3636_v42, 16  ;;  %v1030_v57 = vand.u32 2147483648, %v3574_v17 }
 0x2ca   : > { %v1035_v36 = vsel %vm1034_vm14, %v3550_v53, %v1033_v4  ;;  %v832_v34 = vpop.xlane.xlu1 %831  ;;  %2878 = vrcp.f32 %v1123_v21  ;;  %1293 = vmin.xlane.f32.xlu0 %v3627_v22  ;;  %v1051_v12 = vand.u32 2147483648, %v3596_v29  ;;  %vm1043_vm14 = vcmp.eq.f32.partialorder %v3621_v51, 0.0 }
 0x2cb   : > { %v1038_v35 = vsel %vm1036_vm0, %v1037_v23, %v1035_v36  ;;  %vm970_vm3 = vcmp.eq.s32.totalorder %v3355_v18, %v3625_v33  ;;  %v2871_v46 = vpop.eup %2870  ;;  %v3643_v49 = vand.u32 4294967168, %v3625_v33  ;;  %v833_v40 = vcvt.f32.s32 %v832_v34 }
 0x2cc   : > { %v1126_v53 = vmax.f32 %v1038_v35, 1e-10  ;;  %v3649_v39 = vsel %vm970_vm3, 2147483647, %v3355_v18  ;;  %v1026_v58 = vmul.f32 %v2871_v46, %v3574_v17  ;;  %v3665_v23 = vcvt.s32.f32 %v1276_v10 }
 0x2cd   : > { %v1318_v52 = vshra.s32 %v3649_v39, 16  ;;  %v3663_v21 = vadd.s32 %v3566_v0, %v833_v40  ;;  %v890_v40 = vcvt.f32.s32 %v3480_v27  ;;  %v1065_v59 = vand.u32 2147483648, %v3643_v49 }
 0x2ce   : > { %2880 = vrcp.f32 %v1126_v53  ;;  %v874_v7 = vpop.xlane.xlu1 %873  ;;  %v1028_v4 = vsel %vm1027_vm2, %v3574_v17, %v1026_v58  ;;  %1279 = vmin.xlane.f32.xlu1 %v3665_v23 }
 0x2cf   : > { %v2873_v13 = vpop.eup %2872  ;;  %2882 = vrsqrt.f32 %v3643_v49  ;;  %v1031_v34 = vsel %vm1029_vm4, %v1030_v57, %v1028_v4  ;;  %v875_v46 = vcvt.f32.s32 %v874_v7  ;;  %v3670_v53 = vcvt.s32.f32 %v1318_v52 }
 0x2d0   : > { %v3667_v36 = vpop.eup %2874  ;;  %v1047_v35 = vmul.f32 %v2873_v13, %v3596_v29  ;;  %v1125_v58 = vmax.f32 %v1031_v34, 1e-10  ;;  %vm969_vm10 = vcmp.eq.s32.totalorder %v3360_v20, %v3663_v21  ;;  %v3681_v0 = vand.u32 4294967168, %v3663_v21 }
 0x2d1   : > { %5184 = vst [vmem:[#allocation5_spill] sm:$0xff] %v3667_v36  ;;  %v3676_v17 = vsel %vm964_vm5, %v3667_v36, 0.0  ;;  %v3690_v47 = vadd.s32 %v3568_v2, %v875_v46  ;;  %1321 = vmin.xlane.f32.xlu0 %v3670_v53  ;;  %vm1041_vm5 = vcmp.eq.f32.partialorder %v3621_v51, inf  ;;  %v3698_v27 = vsel %vm969_vm10, 2147483647, %v3360_v20 }
 0x2d2   : > { %5185 = vst [vmem:[#allocation6_spill] sm:$0xff] %v3676_v17  ;;  %v1049_v10 = vsel %vm1048_vm9, %v3596_v29, %v1047_v35  ;;  %v860_v5 = vpop.xlane.xlu1 %859  ;;  %2884 = vrcp.f32 %v1125_v58  ;;  %v1044_v29 = vand.u32 2147483648, %v3621_v51  ;;  %v1304_v46 = vshra.s32 %v3698_v27, 16 }
 0x2d3   : > { %v1052_v52 = vsel %vm1050_vm12, %v1051_v12, %v1049_v10  ;;  %v2877_v57 = vpop.eup %2876  ;;  %2886 = vrsqrt.f32 %v3681_v0  ;;  %vm972_vm13 = vcmp.eq.s32.totalorder %v3369_v30, %v3690_v47  ;;  %v3708_v13 = vand.u32 4294967168, %v3690_v47 }
 0x2d4   : > { %v1128_v7 = vmax.f32 %v1052_v52, 1e-10  ;;  %v3704_v2 = vpop.eup %2878  ;;  %v1040_v12 = vmul.f32 %v2877_v57, %v3621_v51  ;;  %v3714_v4 = vsel %vm972_vm13, 2147483647, %v3369_v30  ;;  %v861_v34 = vcvt.f32.s32 %v860_v5 }
 0x2d5   : > { %5186 = vst [vmem:[#allocation7_spill] sm:$0xff] %v3704_v2  ;;  %v3720_v35 = vsel %vm963_vm6, %v3704_v2, 0.0  ;;  %v1346_v58 = vshra.s32 %v3714_v4, 16  ;;  %v891_v10 = vshll.u32 %v890_v40, 16  ;;  %v918_v40 = vcvt.f32.s32 %v3493_v56 }
 0x2d6   : > { %5187 = vst [vmem:[#allocation8_spill] sm:$0xff] %v3720_v35  ;;  %2888 = vrcp.f32 %v1128_v7  ;;  %v1042_v52 = vsel %vm1041_vm5, %v3621_v51, %v1040_v12  ;;  %v3733_v57 = vadd.s32 %v3587_v25, %v861_v34  ;;  %v3735_v7 = vcvt.s32.f32 %v1304_v46 }
 0x2d7   : > { %2890 = vrsqrt.f32 %v3708_v13  ;;  %v1045_v28 = vsel %vm1043_vm14, %v1044_v29, %v1042_v52  ;;  %v3744_v2 = vcvt.s32.f32 %v1346_v58  ;;  %vm1062_vm6 = vcmp.eq.f32.partialorder %v3643_v49, inf }
 0x2d8   : > { %v3729_v5 = vpop.eup %2880  ;;  %v1127_v12 = vmax.f32 %v1045_v28, 1e-10  ;;  %vm971_vm0 = vcmp.eq.s32.totalorder %v3374_v32, %v3733_v57  ;;  %v3751_v25 = vand.u32 4294967168, %v3733_v57  ;;  %1307 = vmin.xlane.f32.xlu1 %v3735_v7  ;;  %v933_v29 = vshll.u32 %v932_v48, 16 }
 0x2d9   : > { %5188 = vst [vmem:[#allocation9_spill] sm:$0xff] %v3729_v5  ;;  %v2883_v36 = vpop.eup %2882  ;;  %v3742_v51 = vsel %vm966_vm7, %v3729_v5, 0.0  ;;  %v3759_v38 = vsel %vm971_vm0, 2147483647, %v3374_v32  ;;  %1349 = vmin.xlane.f32.xlu0 %v3744_v2  ;;  %vm1064_vm7 = vcmp.eq.f32.partialorder %v3643_v49, 0.0  ;;  %v919_v58 = vshll.u32 %v918_v40, 16 }
 0x2da   : > { %v1061_v44 = vmul.f32 %v2883_v36, %v3643_v49  ;;  %v888_v56 = vpop.xlane.xlu1 %887  ;;  %2892 = vrcp.f32 %v1127_v12  ;;  %v1332_v12 = vshra.s32 %v3759_v38, 16  ;;  %v946_v17 = vcvt.f32.s32 %v3498_v50 }
 0x2db   : > { %v889_v36 = vcvt.f32.s32 %v888_v56  ;;  %2894 = vrsqrt.f32 %v3751_v25  ;;  %vm1055_vm2 = vcmp.eq.f32.partialorder %v3681_v0, inf  ;;  %v1058_v60 = vand.u32 2147483648, %v3681_v0 }
 0x2dc   : > { %v1063_v34 = vsel %vm1062_vm6, %v3643_v49, %v1061_v44  ;;  %v3765_v46 = vpop.eup %2884  ;;  %v3784_v50 = vcvt.s32.f32 %v1332_v12  ;;  %v960_v12 = vcvt.f32.s32 %v3503_v55  ;;  %vm1078_vm9 = vcmp.eq.f32.partialorder %v3708_v13, 0.0 }
 0x2dd   : > { %5189 = vst [vmem:[#allocation10_spill] sm:$0xff] %v3765_v46  ;;  %v1066_v52 = vsel %vm1064_vm7, %v1065_v59, %v1063_v34  ;;  %v3767_v28 = vadd.s32 %v891_v10, %v889_v36  ;;  %v2887_v5 = vpop.eup %2886  ;;  %v3775_v48 = vsel %vm965_vm8, %v3765_v46, 0.0  ;;  %vm1057_vm8 = vcmp.eq.f32.partialorder %v3681_v0, 0.0 }
 0x2de   : > { %v1130_v49 = vmax.f32 %v1066_v52, 1e-10  ;;  %v902_v44 = vpop.xlane.xlu1 %901  ;;  %v930_v56 = vpop.xlane.xlu0 %929  ;;  %v1054_v40 = vmul.f32 %v2887_v5, %v3681_v0  ;;  %1335 = vmin.xlane.f32.xlu1 %v3784_v50  ;;  %v947_v35 = vshll.u32 %v946_v17, 16  ;;  %vm1069_vm12 = vcmp.eq.f32.partialorder %v3751_v25, inf }
 0x2df   : > { %vm973_vm4 = vcmp.eq.s32.totalorder %v3388_v45, %v3767_v28  ;;  %v3782_v10 = vand.u32 4294967168, %v3767_v28  ;;  %v903_v1 = vcvt.f32.s32 %v902_v44  ;;  %v931_v36 = vcvt.f32.s32 %v930_v56 }
 0x2e0   : > { %v3786_v59 = vpop.eup %2888  ;;  %2896 = vrcp.f32 %v1130_v49  ;;  %v1056_v52 = vsel %vm1055_vm2, %v3681_v0, %v1054_v40  ;;  %v3805_v6 = vsel %vm973_vm4, 2147483647, %v3388_v45  ;;  %v1079_v0 = vand.u32 2147483648, %v3708_v13 }
 0x2e1   : > { %5190 = vst [vmem:[#allocation11_spill] sm:$0xff] %v3786_v59  ;;  %v2891_v34 = vpop.eup %2890  ;;  %v3793_v5 = vsel %vm968_vm11, %v3786_v59, 0.0  ;;  %2898 = vrsqrt.f32 %v3782_v10  ;;  %v1059_v49 = vsel %vm1057_vm8, %v1058_v60, %v1056_v52  ;;  %vm1076_vm11 = vcmp.eq.f32.partialorder %v3708_v13, inf }
 0x2e2   : > { %5191 = vst [vmem:[#allocation12_spill] sm:$0xff] %v3793_v5  ;;  %v1075_v44 = vmul.f32 %v2891_v34, %v3708_v13  ;;  %v916_v31 = vpop.xlane.xlu1 %915  ;;  %v1129_v56 = vmax.f32 %v1059_v49, 1e-10  ;;  %v3810_v40 = vadd.s32 %v3591_v24, %v903_v1  ;;  %v3814_v60 = vadd.s32 %v933_v29, %v931_v36 }
 0x2e3   : > { %v917_v34 = vcvt.f32.s32 %v916_v31  ;;  %v1360_v46 = vshra.s32 %v3805_v6, 16  ;;  %v961_v24 = vshll.u32 %v960_v12, 16  ;;  %vm1071_vm14 = vcmp.eq.f32.partialorder %v3751_v25, 0.0 }
 0x2e4   : > { %v1077_v55 = vsel %vm1076_vm11, %v3708_v13, %v1075_v44  ;;  %v3816_v52 = vpop.eup %2892  ;;  %2900 = vrcp.f32 %v1129_v56  ;;  %v3819_v49 = vand.u32 4294967168, %v3810_v40  ;;  %vm974_vm5 = vcmp.eq.s32.totalorder %v3383_v43, %v3810_v40 }
 0x2e5   : > { %5192 = vst [vmem:[#allocation13_spill] sm:$0xff] %v3816_v52  ;;  %v1080_v59 = vsel %vm1078_vm9, %v1079_v0, %v1077_v55  ;;  %v2895_v5 = vpop.eup %2894  ;;  %v3826_v13 = vsel %vm967_vm15, %v3816_v52, 0.0  ;;  %v1072_v17 = vand.u32 2147483648, %v3751_v25  ;;  %v3836_v8 = vand.u32 4294967168, %v3814_v60 }
 0x2e6   : > { %5193 = vst [vmem:[#allocation14_spill] sm:$0xff] %v3826_v13  ;;  %v1132_v29 = vmax.f32 %v1080_v59, 1e-10  ;;  %v1068_v1 = vmul.f32 %v2895_v5, %v3751_v25  ;;  %2902 = vrsqrt.f32 %v3819_v49  ;;  %v3839_v59 = vadd.s32 %v919_v58, %v917_v34 }
 0x2e7   : > { %v944_v36 = vpop.xlane.xlu1 %943  ;;  %v3841_v5 = vcvt.s32.f32 %v1360_v46  ;;  %vm1083_vm15 = vcmp.eq.f32.partialorder %v3782_v10, inf  ;;  %v3850_v56 = vsel %vm974_vm5, 2147483647, %v3383_v43  ;;  %vm976_vm6 = vcmp.eq.s32.totalorder %v3397_v61, %v3814_v60 }
 0x2e8   : > { %2904 = vrcp.f32 %v1132_v29  ;;  %v1070_v41 = vsel %vm1069_vm12, %v3751_v25, %v1068_v1  ;;  %v945_v12 = vcvt.f32.s32 %v944_v36  ;;  %vm975_vm7 = vcmp.eq.s32.totalorder %v3402_v63, %v3839_v59 }
 0x2e9   : > { %v1073_v31 = vsel %vm1071_vm14, %v1072_v17, %v1070_v41  ;;  %2906 = vrsqrt.f32 %v3836_v8  ;;  %1363 = vmin.xlane.f32.xlu1 %v3841_v5  ;;  %v3866_v34 = vand.u32 4294967168, %v3839_v59  ;;  %v3872_v18 = vsel %vm975_vm7, 2147483647, %v3402_v63 }
 0x2ea   : > { %v3843_v44 = vpop.eup %2896  ;;  %v1131_v46 = vmax.f32 %v1073_v31, 1e-10  ;;  %v3874_v33 = vadd.s32 %v947_v35, %v945_v12  ;;  %v1086_v29 = vand.u32 2147483648, %v3782_v10  ;;  %v1374_v1 = vshra.s32 %v3850_v56, 16 }
 0x2eb   : > { %5194 = vst [vmem:[#allocation15_spill] sm:$0xff] %v3843_v44  ;;  %v2899_v0 = vpop.eup %2898  ;;  %v3857_v25 = vsel %vm970_vm3, %v3843_v44, 0.0  ;;  %v958_v58 = vpop.xlane.xlu0 %957  ;;  %vm1085_vm3 = vcmp.eq.f32.partialorder %v3782_v10, 0.0  ;;  %v1388_v41 = vshra.s32 %v3872_v18, 16  ;;  %v3890_v12 = vsel %vm976_vm6, 2147483647, %v3397_v61 }
 0x2ec   : > { %5195 = vst [vmem:[#allocation16_spill] sm:$0xff] %v3857_v25  ;;  %v1082_v55 = vmul.f32 %v2899_v0, %v3782_v10  ;;  %2908 = vrcp.f32 %v1131_v46  ;;  %v959_v17 = vcvt.f32.s32 %v958_v58  ;;  %vm977_vm2 = vcmp.eq.s32.totalorder %v3416_v16, %v3874_v33 }
 0x2ed   : > { %2910 = vrsqrt.f32 %v3866_v34  ;;  %v3895_v0 = vand.u32 4294967168, %v3874_v33  ;;  %v3907_v58 = vsel %vm977_vm2, 2147483647, %v3416_v16  ;;  %vm1090_vm8 = vcmp.eq.f32.partialorder %v3819_v49, inf }
 0x2ee   : > { %v1084_v36 = vsel %vm1083_vm15, %v3782_v10, %v1082_v55  ;;  %v3884_v31 = vpop.eup %2900  ;;  %v3909_v55 = vcvt.s32.f32 %v1374_v1  ;;  %v3917_v21 = vadd.s32 %v961_v24, %v959_v17  ;;  %v1093_v44 = vand.u32 2147483648, %v3819_v49 }
 0x2ef   : > { %5196 = vst [vmem:[#allocation17_spill] sm:$0xff] %v3884_v31  ;;  %v1087_v35 = vsel %vm1085_vm3, %v1086_v29, %v1084_v36  ;;  %v3901_v10 = vsel %vm969_vm10, %v3884_v31, 0.0  ;;  %2912 = vrsqrt.f32 %v3895_v0  ;;  %v1402_v31 = vshra.s32 %v3890_v12, 16 }
 0x2f0   : > { %5197 = vst [vmem:[#allocation18_spill] sm:$0xff] %v3901_v10  ;;  %v1133_v46 = vmax.f32 %v1087_v35, 1e-10  ;;  %v2903_v29 = vpop.eup %2902  ;;  %1377 = vmin.xlane.f32.xlu0 %v3909_v55  ;;  %v3919_v35 = vcvt.s32.f32 %v1388_v41  ;;  %vm1092_vm10 = vcmp.eq.f32.partialorder %v3819_v49, 0.0  ;;  %vm978_vm11 = vcmp.eq.s32.totalorder %v3413_v15, %v3917_v21 }
 0x2f1   : > { %v1089_v20 = vmul.f32 %v2903_v29, %v3819_v49  ;;  %v994_v24 = vand.u32 4294967168, %v3917_v21  ;;  %v3941_v17 = vsel %vm978_vm11, 2147483647, %v3413_v15  ;;  %v3943_v41 = vcvt.s32.f32 %v1402_v31 }
 0x2f2   : > { %v3913_v36 = vpop.eup %2904  ;;  %2914 = vrcp.f32 %v1133_v46  ;;  %v1416_v46 = vshra.s32 %v3907_v58, 16  ;;  %1391 = vmin.xlane.f32.xlu1 %v3919_v35  ;;  %vm1106_vm9 = vcmp.eq.f32.partialorder %v3836_v8, 0.0  ;;  %vm1097_vm12 = vcmp.eq.f32.partialorder %v3866_v34, inf }
 0x2f3   : > { %5198 = vst [vmem:[#allocation19_spill] sm:$0xff] %v3913_v36  ;;  %v3925_v1 = vsel %vm972_vm13, %v3913_v36, 0.0  ;;  %v2907_v10 = vpop.eup %2906  ;;  %v1091_v29 = vsel %vm1090_vm8, %v3819_v49, %v1089_v20  ;;  %vm1104_vm13 = vcmp.eq.f32.partialorder %v3836_v8, inf  ;;  %v1107_v49 = vand.u32 2147483648, %v3836_v8 }
 0x2f4   : > { %5199 = vst [vmem:[#allocation20_spill] sm:$0xff] %v3925_v1  ;;  %v1094_v30 = vsel %vm1092_vm10, %v1093_v44, %v1091_v29  ;;  %v1103_v47 = vmul.f32 %v2907_v10, %v3836_v8  ;;  %2916 = vrsqrt.f32 %v994_v24  ;;  %1405 = vmin.xlane.f32.xlu0 %v3943_v41  ;;  %v3952_v10 = vcvt.s32.f32 %v1416_v46 }
 0x2f5   : > { %v1134_v20 = vmax.f32 %v1094_v30, 1e-10  ;;  %v1430_v29 = vshra.s32 %v3941_v17, 16  ;;  %v1100_v46 = vand.u32 2147483648, %v3866_v34  ;;  %vm1111_vm14 = vcmp.eq.f32.partialorder %v3895_v0, inf }
 0x2f6   : > { %v3947_v36 = vpop.eup %2908  ;;  %v1105_v44 = vsel %vm1104_vm13, %v3836_v8, %v1103_v47  ;;  %1419 = vmin.xlane.f32.xlu1 %v3952_v10  ;;  %vm1113_vm15 = vcmp.eq.f32.partialorder %v3895_v0, 0.0  ;;  %vm1118_vm3 = vcmp.eq.f32.partialorder %v994_v24, inf  ;;  %v1121_v45 = vand.u32 2147483648, %v994_v24 }
 0x2f7   : > { %v2911_v31 = vpop.eup %2910  ;;  %v3959_v30 = vsel %vm971_vm0, %v3947_v36, 0.0  ;;  %2918 = vrcp.f32 %v1134_v20  ;;  %v1108_v1 = vsel %vm1106_vm9, %v1107_v49, %v1105_v44  ;;  %v3963_v8 = vcvt.s32.f32 %v1430_v29 }
 0x2f8   : > { %v1136_v25 = vmax.f32 %v1108_v1, 1e-10  ;;  %v1096_v47 = vmul.f32 %v2911_v31, %v3866_v34  ;;  %vm1099_vm0 = vcmp.eq.f32.partialorder %v3866_v34, 0.0  ;;  %v1233_v63 = vand.u32 65535, %v3519_v26 }
 0x2f9   : > { %v2913_v52 = vpop.eup %2912  ;;  %1433 = vmin.xlane.f32.xlu0 %v3963_v8  ;;  %v1219_v16 = vand.u32 65535, %v3541_v54  ;;  %v1261_v33 = vand.u32 65535, %v3557_v3 }
 0x2fa   : > { %2920 = vrcp.f32 %v1136_v25  ;;  %v1098_v13 = vsel %vm1097_vm12, %v3866_v34, %v1096_v47  ;;  %v1110_v1 = vmul.f32 %v2913_v52, %v3895_v0  ;;  %v1114_v25 = vand.u32 2147483648, %v3895_v0 }
 0x2fb   : > { %v1101_v57 = vsel %vm1099_vm0, %v1100_v46, %v1098_v13 }
 0x2fc   : > { %v3970_v32 = vpop.eup %2914  ;;  %v1135_v49 = vmax.f32 %v1101_v57, 1e-10  ;;  %v1112_v34 = vsel %vm1111_vm14, %v3895_v0, %v1110_v1 }
 0x2fd   : > { %v3977_v20 = vsel %vm973_vm4, %v3970_v32, 0.0  ;;  %v1115_v44 = vsel %vm1113_vm15, %v1114_v25, %v1112_v34  ;;  %vm1120_vm4 = vcmp.eq.f32.partialorder %v994_v24, 0.0  ;;  %v1235_v25 = vcvt.s32.f32 %v1233_v63 }
 0x2fe   : > { %2922 = vrcp.f32 %v1135_v49  ;;  %v2917_v13 = vpop.eup %2916  ;;  %v1137_v29 = vmax.f32 %v1115_v44, 1e-10 }
 0x2ff   : > { %v1117_v52 = vmul.f32 %v2917_v13, %v994_v24  ;;  %v1221_v13 = vcvt.s32.f32 %v1219_v16 }
 0x300   : > { %2924 = vrcp.f32 %v1137_v29  ;;  %v1263_v29 = vcvt.s32.f32 %v1261_v33 }
 0x301   : > { %v3983_v31 = vpop.eup %2918  ;;  %v1119_v47 = vsel %vm1118_vm3, %v994_v24, %v1117_v52  ;;  %v1247_v52 = vand.u32 65535, %v3583_v14 }
 0x302   : > { %v3989_v28 = vsel %vm974_vm5, %v3983_v31, 0.0  ;;  %v1122_v46 = vsel %vm1120_vm4, %v1121_v45, %v1119_v47  ;;  %v1289_v45 = vand.u32 65535, %v3602_v11 }
 0x303   : > { %v1138_v57 = vmax.f32 %v1122_v46, 1e-10  ;;  %v1249_v46 = vcvt.s32.f32 %v1247_v52 }
 0x304   : > { %v3991_v0 = vpop.eup %2920  ;;  %v1291_v63 = vcvt.s32.f32 %v1289_v45 }
 0x305   : > { %5200 = vst [vmem:[#allocation21_spill] sm:$0xff] %v3991_v0  ;;  %v3997_v1 = vsel %vm976_vm6, %v3991_v0, 0.0  ;;  %2926 = vrcp.f32 %v1138_v57 }
 0x306   : > { %5201 = vst [vmem:[#allocation22_spill] sm:$0xff] %v3997_v1 }
 0x308   : > { %v3999_v49 = vpop.eup %2922 }
 0x309   : > { %5202 = vst [vmem:[#allocation23_spill] sm:$0xff] %v3999_v49  ;;  %v4005_v43 = vsel %vm975_vm7, %v3999_v49, 0.0 }
 0x30a   : > { %v4007_v40 = vpop.eup %2924 }
 0x30b   : > { %5203 = vst [vmem:[#allocation24_spill] sm:$0xff] %v4007_v40  ;;  %v4013_v24 = vsel %vm977_vm2, %v4007_v40, 0.0 }
 0x30c   : > { %5204 = vst [vmem:[#allocation25_spill] sm:$0xff] %v4013_v24 }
 0x30f   : > { %v4015_v61 = vpop.eup %2926 }
 0x310   : > { %5205 = vst [vmem:[#allocation26_spill] sm:$0xff] %v4015_v61  ;;  %v4021_v60 = vsel %vm978_vm11, %v4015_v61, 0.0 }
 0x311   : > { %5206 = vst [vmem:[#allocation27_spill] sm:$0xff] %v4021_v60 }
 0x346   : > { %v4024_v59 = vpop.xlane.xlu0 %1237 }
 0x347   : > { %vm1239_vm5 = vcmp.eq.f32.partialorder %v3531_v37, %v4024_v59 }
 0x348   : > { %v1240_v34 = vsel %vm1239_vm5, %v1235_v25, inf  ;;  %v1275_v25 = vand.u32 65535, %v3636_v42 }
 0x349   : > { %1241 = vmin.xlane.f32.xlu0 %v1240_v34  ;;  %v1317_v34 = vand.u32 65535, %v3649_v39 }
 0x34a   : > { %v4030_v44 = vpop.xlane.xlu1 %1223  ;;  %v1277_v33 = vcvt.s32.f32 %v1275_v25 }
 0x34b   : > { %vm1225_vm6 = vcmp.eq.f32.partialorder %v3563_v9, %v4030_v44 }
 0x34c   : > { %v1226_v15 = vsel %vm1225_vm6, %v1221_v13, inf  ;;  %v1319_v13 = vcvt.s32.f32 %v1317_v34 }
 0x34d   : > { %1227 = vmin.xlane.f32.xlu1 %v1226_v15 }
 0x34e   : > { %v4034_v21 = vpop.xlane.xlu0 %1265 }
 0x34f   : > { %vm1267_vm7 = vcmp.eq.f32.partialorder %v3577_v19, %v4034_v21 }
 0x350   : > { %v1268_v37 = vsel %vm1267_vm7, %v1263_v29, inf  ;;  %v1303_v29 = vand.u32 65535, %v3698_v27 }
 0x351   : > { %1269 = vmin.xlane.f32.xlu0 %v1268_v37  ;;  %v1345_v37 = vand.u32 65535, %v3714_v4 }
 0x352   : > { %v1305_v45 = vcvt.s32.f32 %v1303_v29 }
 0x353   : > { %v4040_v47 = vpop.xlane.xlu1 %1251 }
 0x354   : > { %vm1253_vm2 = vcmp.eq.f32.partialorder %v3612_v62, %v4040_v47 }
 0x355   : > { %v1254_v9 = vsel %vm1253_vm2, %v1249_v46, inf  ;;  %v1347_v46 = vcvt.s32.f32 %v1345_v37 }
 0x356   : > { %1255 = vmin.xlane.f32.xlu1 %v1254_v9 }
 0x357   : > { %v4044_v57 = vpop.xlane.xlu0 %1293 }
 0x358   : > { %vm1295_vm8 = vcmp.eq.f32.partialorder %v3627_v22, %v4044_v57 }
 0x359   : > { %v1296_v19 = vsel %vm1295_vm8, %v1291_v63, inf  ;;  %v1331_v63 = vand.u32 65535, %v3759_v38 }
 0x35a   : > { %1297 = vmin.xlane.f32.xlu0 %v1296_v19 }
 0x35b   : > { %v4050_v16 = vpop.xlane.xlu1 %1279  ;;  %v1333_v25 = vcvt.s32.f32 %v1331_v63 }
 0x35c   : > { %vm1281_vm10 = vcmp.eq.f32.partialorder %v3665_v23, %v4050_v16 }
 0x35d   : > { %v1282_v15 = vsel %vm1281_vm10, %v1277_v33, inf }
 0x35e   : > { %v4054_v62 = vpop.xlane.xlu0 %1321  ;;  %1283 = vmin.xlane.f32.xlu1 %v1282_v15  ;;  %v1373_v15 = vand.u32 65535, %v3850_v56 }
 0x35f   : > { %vm1323_vm11 = vcmp.eq.f32.partialorder %v3670_v53, %v4054_v62 }
 0x360   : > { %v1324_v22 = vsel %vm1323_vm11, %v1319_v13, inf  ;;  %v1375_v37 = vcvt.s32.f32 %v1373_v15 }
 0x361   : > { %1325 = vmin.xlane.f32.xlu0 %v1324_v22  ;;  %v1387_v22 = vand.u32 65535, %v3872_v18 }
 0x365   : > { %v4060_v52 = vpop.xlane.xlu1 %1307 }
 0x366   : > { %vm1309_vm13 = vcmp.eq.f32.partialorder %v3735_v7, %v4060_v52  ;;  %v4064_v23 = vpop.xlane.xlu0 %1349  ;;  %v1359_v7 = vand.u32 65535, %v3805_v6 }
 0x367   : > { %v1310_v9 = vsel %vm1309_vm13, %v1305_v45, inf  ;;  %vm1351_vm9 = vcmp.eq.f32.partialorder %v3744_v2, %v4064_v23 }
 0x368   : > { %1311 = vmin.xlane.f32.xlu1 %v1310_v9  ;;  %v1352_v53 = vsel %vm1351_vm9, %v1347_v46, inf  ;;  %v1361_v13 = vcvt.s32.f32 %v1359_v7  ;;  %v1389_v9 = vcvt.s32.f32 %v1387_v22 }
 0x369   : > { %1353 = vmin.xlane.f32.xlu0 %v1352_v53 }
 0x36b   : > { %v4069_v19 = vpop.xlane.xlu1 %1335 }
 0x36c   : > { %vm1337_vm12 = vcmp.eq.f32.partialorder %v3784_v50, %v4069_v19  ;;  %v1401_v50 = vand.u32 65535, %v3890_v12 }
 0x36d   : > { %v1338_v34 = vsel %vm1337_vm12, %v1333_v25, inf }
 0x36e   : > { %1339 = vmin.xlane.f32.xlu1 %v1338_v34  ;;  %v1403_v25 = vcvt.s32.f32 %v1401_v50  ;;  %v1429_v34 = vand.u32 65535, %v3941_v17 }
 0x370   : > { %v1431_v15 = vcvt.s32.f32 %v1429_v34 }
 0x376   : > { %v4074_v33 = vpop.xlane.xlu1 %1363 }
 0x377   : > { %vm1365_vm0 = vcmp.eq.f32.partialorder %v3841_v5, %v4074_v33  ;;  %v1415_v5 = vand.u32 65535, %v3907_v58 }
 0x378   : > { %v1366_v2 = vsel %vm1365_vm0, %v1361_v13, inf }
 0x379   : > { %1367 = vmin.xlane.f32.xlu1 %v1366_v2  ;;  %v1417_v13 = vcvt.s32.f32 %v1415_v5  ;;  %v1230_v5 = vcvt.f32.s32 %v4030_v44 }
 0x37d   : > { %v4080_v29 = vpop.xlane.xlu0 %1377 }
 0x37e   : > { %vm1379_vm14 = vcmp.eq.f32.partialorder %v3909_v55, %v4080_v29 }
 0x37f   : > { %v1380_v45 = vsel %vm1379_vm14, %v1375_v37, inf  ;;  %v4085_v46 = vpop.xlane.xlu1 %1391 }
 0x380   : > { %1381 = vmin.xlane.f32.xlu0 %v1380_v45  ;;  %vm1393_vm15 = vcmp.eq.f32.partialorder %v3919_v35, %v4085_v46 }
 0x381   : > { %v1394_v53 = vsel %vm1393_vm15, %v1389_v9, inf  ;;  %v4090_v63 = vpop.xlane.xlu0 %1405 }
 0x382   : > { %1395 = vmin.xlane.f32.xlu1 %v1394_v53  ;;  %vm1407_vm3 = vcmp.eq.f32.partialorder %v3943_v41, %v4090_v63  ;;  %v1244_v41 = vcvt.f32.s32 %v4024_v59 }
 0x383   : > { %v1408_v55 = vsel %vm1407_vm3, %v1403_v25, inf  ;;  %v4095_v7 = vpop.xlane.xlu1 %1419  ;;  %v1231_v25 = vshll.u32 %v1230_v5, 16 }
 0x384   : > { %1409 = vmin.xlane.f32.xlu0 %v1408_v55  ;;  %vm1421_vm4 = vcmp.eq.f32.partialorder %v3952_v10, %v4095_v7  ;;  %v1245_v50 = vshll.u32 %v1244_v41, 16  ;;  %v1272_v10 = vcvt.f32.s32 %v4034_v21  ;;  %v1300_v41 = vcvt.f32.s32 %v4044_v57 }
 0x385   : > { %v1422_v35 = vsel %vm1421_vm4, %v1417_v13, inf }
 0x386   : > { %v4099_v2 = vpop.xlane.xlu0 %1433  ;;  %1423 = vmin.xlane.f32.xlu1 %v1422_v35  ;;  %v1273_v55 = vshll.u32 %v1272_v10, 16  ;;  %v1258_v35 = vcvt.f32.s32 %v4040_v47  ;;  %v1301_v10 = vshll.u32 %v1300_v41, 16 }
 0x387   : > { %vm1435_vm5 = vcmp.eq.f32.partialorder %v3963_v8, %v4099_v2 }
 0x388   : > { %v1436_v22 = vsel %vm1435_vm5, %v1431_v15, inf }
 0x389   : > { %1437 = vmin.xlane.f32.xlu0 %v1436_v22 }
 0x3d6   : > { %v1242_v37 = vpop.xlane.xlu0 %1241 }
 0x3d7   : > { %v1243_v45 = vcvt.f32.s32 %v1242_v37 }
 0x3d9   : > { %v4104_v9 = vadd.s32 %v1245_v50, %v1243_v45  ;;  %v1259_v45 = vshll.u32 %v1258_v35, 16  ;;  %v1342_v35 = vcvt.f32.s32 %v4069_v19 }
 0x3da   : > { %v1228_v8 = vpop.xlane.xlu1 %1227 }
 0x3db   : > { %vm1444_vm6 = vcmp.eq.s32.totalorder %v3519_v26, %v4104_v9  ;;  %v4111_v53 = vand.u32 4294967168, %v4104_v9  ;;  %v1229_v34 = vcvt.f32.s32 %v1228_v8  ;;  %v1286_v8 = vcvt.f32.s32 %v4050_v16 }
 0x3dc   : > { %v4117_v59 = vsel %vm1444_vm6, 2147483647, %v3519_v26  ;;  %v1370_v16 = vcvt.f32.s32 %v4074_v33 }
 0x3dd   : > { %5207 = vst [vmem:[#allocation28_spill] sm:$0xff] %v4117_v59  ;;  %2928 = vrsqrt.f32 %v4111_v53  ;;  %v1714_v21 = vshra.s32 %v4117_v59, 16  ;;  %v4122_v15 = vadd.s32 %v1231_v25, %v1229_v34  ;;  %v1328_v25 = vcvt.f32.s32 %v4054_v62 }
 0x3de   : > { %v1270_v44 = vpop.xlane.xlu0 %1269  ;;  %v1314_v34 = vcvt.f32.s32 %v4060_v52  ;;  %v1384_v52 = vcvt.f32.s32 %v4080_v29  ;;  %v1287_v61 = vshll.u32 %v1286_v8, 16  ;;  %vm1500_vm10 = vcmp.eq.f32.partialorder %v4111_v53, inf }
 0x3df   : > { %v1271_v13 = vcvt.f32.s32 %v1270_v44  ;;  %v4124_v22 = vcvt.s32.f32 %v1714_v21  ;;  %vm1443_vm7 = vcmp.eq.s32.totalorder %v3541_v54, %v4122_v15  ;;  %v4132_v50 = vand.u32 4294967168, %v4122_v15 }
 0x3e0   : > { %v4144_v57 = vsel %vm1443_vm7, 2147483647, %v3541_v54  ;;  %v1329_v60 = vshll.u32 %v1328_v25, 16  ;;  %vm1502_vm11 = vcmp.eq.f32.partialorder %v4111_v53, 0.0 }
 0x3e1   : > { %5208 = vst [vmem:[#allocation29_spill] sm:$0xff] %v4124_v22  ;;  %v4127_v37 = vadd.s32 %v1273_v55, %v1271_v13  ;;  %1717 = vmin.xlane.f32.xlu0 %v4124_v22  ;;  %5209 = vst [vmem:[#allocation30_spill] sm:$0xff] %v4144_v57  ;;  %2930 = vrsqrt.f32 %v4132_v50  ;;  %v1700_v21 = vshra.s32 %v4144_v57, 16  ;;  %v1356_v13 = vcvt.f32.s32 %v4064_v23 }
 0x3e2   : > { %v4169_v23 = vshll.u32 %v1314_v34, 16  ;;  %v4191_v34 = vshll.u32 %v1370_v16, 16  ;;  %vm1493_vm9 = vcmp.eq.f32.partialorder %v4132_v50, inf  ;;  %vm1495_vm15 = vcmp.eq.f32.partialorder %v4132_v50, 0.0 }
 0x3e3   : > { %vm1446_vm2 = vcmp.eq.s32.totalorder %v3557_v3, %v4127_v37  ;;  %v4138_v47 = vand.u32 4294967168, %v4127_v37  ;;  %v1256_v5 = vpop.xlane.xlu1 %1255  ;;  %v4165_v57 = vcvt.s32.f32 %v1700_v21  ;;  %v4179_v29 = vshll.u32 %v1356_v13, 16 }
 0x3e4   : > { %v1257_v44 = vcvt.f32.s32 %v1256_v5  ;;  %v4156_v55 = vsel %vm1446_vm2, 2147483647, %v3557_v3  ;;  %v1503_v13 = vand.u32 2147483648, %v4111_v53 }
 0x3e5   : > { %2932 = vrsqrt.f32 %v4138_v47  ;;  %5210 = vst [vmem:[#allocation31_spill] sm:$0xff] %v4156_v55  ;;  %v1742_v41 = vshra.s32 %v4156_v55, 16  ;;  %5211 = vst [vmem:[#allocation32_spill] sm:$0xff] %v4165_v57  ;;  %1703 = vmin.xlane.f32.xlu1 %v4165_v57  ;;  %vm1514_vm12 = vcmp.eq.f32.partialorder %v4138_v47, inf  ;;  %vm1516_vm0 = vcmp.eq.f32.partialorder %v4138_v47, 0.0 }
 0x3e6   : > { %v4163_v5 = vadd.s32 %v1259_v45, %v1257_v44  ;;  %v4181_v45 = vshll.u32 %v1342_v35, 16  ;;  %v4193_v44 = vshll.u32 %v1384_v52, 16  ;;  %v1517_v24 = vand.u32 2147483648, %v4138_v47 }
 0x3e7   : > { %v1298_v62 = vpop.xlane.xlu0 %1297  ;;  %v2929_v22 = vpop.eup %2928  ;;  %v4167_v40 = vcvt.s32.f32 %v1742_v41 }
 0x3e8   : > { %v1299_v59 = vcvt.f32.s32 %v1298_v62  ;;  %vm1445_vm8 = vcmp.eq.s32.totalorder %v3583_v14, %v4163_v5  ;;  %v4174_v19 = vand.u32 4294967168, %v4163_v5  ;;  %v1499_v8 = vmul.f32 %v2929_v22, %v4111_v53 }
 0x3e9   : > { %5212 = vst [vmem:[#allocation33_spill] sm:$0xff] %v4167_v40  ;;  %1745 = vmin.xlane.f32.xlu0 %v4167_v40  ;;  %v4189_v25 = vsel %vm1445_vm8, 2147483647, %v3583_v14 }
 0x3ea   : > { %v4177_v33 = vadd.s32 %v1301_v10, %v1299_v59  ;;  %5213 = vst [vmem:[#allocation34_spill] sm:$0xff] %v4189_v25  ;;  %2934 = vrsqrt.f32 %v4174_v19  ;;  %v1728_v10 = vshra.s32 %v4189_v25, 16  ;;  %v1501_v52 = vsel %vm1500_vm10, %v4111_v53, %v1499_v8 }
 0x3eb   : > { %v1284_v22 = vpop.xlane.xlu1 %1283  ;;  %v2931_v21 = vpop.eup %2930  ;;  %v1496_v25 = vand.u32 2147483648, %v4132_v50  ;;  %vm1507_vm4 = vcmp.eq.f32.partialorder %v4174_v19, inf  ;;  %vm1509_vm5 = vcmp.eq.f32.partialorder %v4174_v19, 0.0 }
 0x3ec   : > { %vm1448_vm13 = vcmp.eq.s32.totalorder %v3602_v11, %v4177_v33  ;;  %v4201_v59 = vand.u32 4294967168, %v4177_v33  ;;  %v1285_v35 = vcvt.f32.s32 %v1284_v22  ;;  %v1492_v40 = vmul.f32 %v2931_v21, %v4132_v50 }
 0x3ed   : > { %v4210_v62 = vsel %vm1448_vm13, 2147483647, %v3602_v11  ;;  %v4220_v55 = vcvt.s32.f32 %v1728_v10  ;;  %v1504_v21 = vsel %vm1502_vm11, %v1503_v13, %v1501_v52  ;;  %v1510_v13 = vand.u32 2147483648, %v4174_v19 }
 0x3ee   : > { %v1326_v16 = vpop.xlane.xlu0 %1325  ;;  %5214 = vst [vmem:[#allocation35_spill] sm:$0xff] %v4210_v62  ;;  %2936 = vrsqrt.f32 %v4201_v59  ;;  %v4218_v22 = vadd.s32 %v1287_v61, %v1285_v35  ;;  %v1770_v8 = vshra.s32 %v4210_v62, 16  ;;  %vm1528_vm10 = vcmp.eq.f32.partialorder %v4201_v59, inf }
 0x3ef   : > { %v2933_v41 = vpop.eup %2932  ;;  %5215 = vst [vmem:[#allocation36_spill] sm:$0xff] %v4220_v55  ;;  %v1327_v0 = vcvt.f32.s32 %v1326_v16  ;;  %1731 = vmin.xlane.f32.xlu1 %v4220_v55  ;;  %vm1530_vm11 = vcmp.eq.f32.partialorder %v4201_v59, 0.0 }
 0x3f0   : > { %v1513_v57 = vmul.f32 %v2933_v41, %v4138_v47  ;;  %v1494_v41 = vsel %vm1493_vm9, %v4132_v50, %v1492_v40  ;;  %v4232_v61 = vand.u32 4294967168, %v4218_v22  ;;  %vm1447_vm14 = vcmp.eq.s32.totalorder %v3636_v42, %v4218_v22  ;;  %v5231_v22 = vld [vmem:[#allocation9_spill] sm:$0xff] }
 0x3f1   : > { %v4237_v35 = vadd.s32 %v1329_v60, %v1327_v0  ;;  %v4239_v16 = vcvt.s32.f32 %v1770_v8  ;;  %v4255_v60 = vsel %vm1447_vm14, 2147483647, %v3636_v42 }
 0x3f2   : > { %v1515_v1 = vsel %vm1514_vm12, %v4138_v47, %v1513_v57  ;;  %2938 = vrsqrt.f32 %v4232_v61  ;;  %v1604_v47 = vmax.f32 %v1504_v21, 1e-10  ;;  %v1497_v57 = vsel %vm1495_vm15, %v1496_v25, %v1494_v41 }
 0x3f3   : > { %v1518_v10 = vsel %vm1516_vm0, %v1517_v24, %v1515_v1  ;;  %5216 = vst [vmem:[#allocation37_spill] sm:$0xff] %v4239_v16  ;;  %vm1450_vm3 = vcmp.eq.s32.totalorder %v3649_v39, %v4237_v35  ;;  %v4247_v1 = vand.u32 4294967168, %v4237_v35  ;;  %1773 = vmin.xlane.f32.xlu0 %v4239_v16  ;;  %v1603_v8 = vmax.f32 %v1497_v57, 1e-10 }
 0x3f4   : > { %v1606_v40 = vmax.f32 %v1518_v10, 1e-10  ;;  %v2935_v0 = vpop.eup %2934  ;;  %v4261_v50 = vsel %vm1450_vm3, 2147483647, %v3649_v39  ;;  %v1756_v41 = vshra.s32 %v4255_v60, 16  ;;  %vm1521_vm0 = vcmp.eq.f32.partialorder %v4232_v61, inf }
 0x3f5   : > { %v1312_v24 = vpop.xlane.xlu1 %1311  ;;  %v1506_v25 = vmul.f32 %v2935_v0, %v4174_v19  ;;  %v1798_v0 = vshra.s32 %v4261_v50, 16  ;;  %vm1523_vm15 = vcmp.eq.f32.partialorder %v4232_v61, 0.0 }
 0x3f6   : > { %2940 = vrcp.f32 %v1606_v40  ;;  %v1354_v52 = vpop.xlane.xlu0 %1353  ;;  %v1313_v21 = vcvt.f32.s32 %v1312_v24  ;;  %v4275_v49 = vcvt.s32.f32 %v1756_v41  ;;  %v1531_v24 = vand.u32 2147483648, %v4201_v59 }
 0x3f7   : > { %2942 = vrsqrt.f32 %v4247_v1  ;;  %v1355_v10 = vcvt.f32.s32 %v1354_v52  ;;  %v1508_v53 = vsel %vm1507_vm4, %v4174_v19, %v1506_v25  ;;  %vm1542_vm4 = vcmp.eq.f32.partialorder %v4247_v1, inf }
 0x3f8   : > { %v2937_v40 = vpop.eup %2936  ;;  %2944 = vrcp.f32 %v1604_v47  ;;  %v1511_v16 = vsel %vm1509_vm5, %v1510_v13, %v1508_v53  ;;  %v4273_v62 = vadd.s32 %v4169_v23, %v1313_v21  ;;  %v4281_v47 = vcvt.s32.f32 %v1798_v0  ;;  %1759 = vmin.xlane.f32.xlu1 %v4275_v49 }
 0x3f9   : > { %v1527_v55 = vmul.f32 %v2937_v40, %v4201_v59  ;;  %v1605_v57 = vmax.f32 %v1511_v16, 1e-10  ;;  %v4279_v52 = vadd.s32 %v4179_v29, %v1355_v10  ;;  %2946 = vrcp.f32 %v1603_v8 }
 0x3fa   : > { %v4286_v53 = vand.u32 4294967168, %v4273_v62  ;;  %v1412_v23 = vcvt.f32.s32 %v4090_v63  ;;  %1801 = vmin.xlane.f32.xlu0 %v4281_v47  ;;  %vm1449_vm9 = vcmp.eq.s32.totalorder %v3698_v27, %v4273_v62 }
 0x3fb   : > { %v1529_v19 = vsel %vm1528_vm10, %v4201_v59, %v1527_v55  ;;  %2948 = vrcp.f32 %v1605_v57  ;;  %v4291_v25 = vand.u32 4294967168, %v4279_v52  ;;  %v1340_v29 = vpop.xlane.xlu1 %1339  ;;  %vm1452_vm12 = vcmp.eq.s32.totalorder %v3714_v4, %v4279_v52 }
 0x3fc   : > { %v1532_v16 = vsel %vm1530_vm11, %v1531_v24, %v1529_v19  ;;  %v2939_v13 = vpop.eup %2938  ;;  %2950 = vrsqrt.f32 %v4286_v53  ;;  %v1524_v59 = vand.u32 2147483648, %v4232_v61  ;;  %v1341_v21 = vcvt.f32.s32 %v1340_v29 }
 0x3fd   : > { %v1608_v8 = vmax.f32 %v1532_v16, 1e-10  ;;  %v1520_v63 = vmul.f32 %v2939_v13, %v4232_v61  ;;  %2952 = vrsqrt.f32 %v4291_v25  ;;  %v4319_v0 = vsel %vm1449_vm9, 2147483647, %v3698_v27 }
 0x3fe   : > { %v4325_v57 = vsel %vm1452_vm12, 2147483647, %v3714_v4  ;;  %v4329_v3 = vadd.s32 %v4181_v45, %v1341_v21  ;;  %v1545_v16 = vand.u32 2147483648, %v4247_v1  ;;  %vm1535_vm10 = vcmp.eq.f32.partialorder %v4286_v53, inf }
 0x3ff   : > { %2954 = vrcp.f32 %v1608_v8  ;;  %v1522_v40 = vsel %vm1521_vm0, %v4232_v61, %v1520_v63  ;;  %v1826_v29 = vshra.s32 %v4325_v57, 16  ;;  %vm1537_vm11 = vcmp.eq.f32.partialorder %v4286_v53, 0.0 }
 0x400   : > { %v4303_v55 = vpop.eup %2940  ;;  %v1525_v24 = vsel %vm1523_vm15, %v1524_v59, %v1522_v40  ;;  %vm1451_vm5 = vcmp.eq.s32.totalorder %v3759_v38, %v4329_v3  ;;  %v4341_v45 = vand.u32 4294967168, %v4329_v3  ;;  %vm1556_vm0 = vcmp.eq.f32.partialorder %v4291_v25, inf }
 0x401   : > { %v2943_v41 = vpop.eup %2942  ;;  %v4312_v10 = vsel %vm1446_vm2, %v4303_v55, %v3742_v51  ;;  %v1784_v51 = vshra.s32 %v4319_v0, 16  ;;  %v1607_v61 = vmax.f32 %v1525_v24, 1e-10  ;;  %vm1544_vm2 = vcmp.eq.f32.partialorder %v4247_v1, 0.0 }
 0x402   : > { %5217 = vst [vmem:[#allocation38_spill] sm:$0xff] %v4312_v10  ;;  %v1541_v19 = vmul.f32 %v2943_v41, %v4247_v1  ;;  %v2945_v37 = vpop.eup %2944  ;;  %v4349_v59 = vsel %vm1451_vm5, 2147483647, %v3759_v38  ;;  %v4351_v21 = vcvt.s32.f32 %v1826_v29  ;;  %v5221_v41 = vcvt.f32.s32 %v4085_v46  ;;  %v2860_v38 = vld [vmem:[%s5138_s4 + $0x8] sm:$0xff]  }
 0x403   : > { %v4343_v8 = vcvt.s32.f32 %v1784_v51  ;;  %2956 = vrcp.f32 %v1607_v61  ;;  %5219 = vst [vmem:[#allocation40_spill] sm:$0xff] %v4349_v59  ;;  %v4361_v24 = vshll.u32 %v1412_v23, 16  ;;  %v419_v51 = vld [vmem:[%s414_s20] sm:$0xf]  ;;  %v1812_v46 = vshra.s32 %v4349_v59, 16 }
 0x404   : > { %v1543_v13 = vsel %vm1542_vm4, %v4247_v1, %v1541_v19  ;;  %5220 = vst [vmem:[#allocation41_spill] sm:$0xff] %v4351_v21  ;;  %v2947_v1 = vpop.eup %2946  ;;  %v4359_v40 = vshll.u32 %v5221_v41, 16  ;;  %2958 = vrsqrt.f32 %v4341_v45  ;;  %1829 = vmin.xlane.f32.xlu0 %v4351_v21  ;;  %2795 = vmatprep.subr.msk.bf16.mxu0 %vm439_vm1, %v419_v51  ;;  %v2241_v23 = vsel %vm439_vm1, %v419_v51, 0  ;;  %v5222_v51 = vld [vmem:[#allocation8_spill] sm:$0xff] }
 0x405   : > { %5218 = vst [vmem:[#allocation39_spill] sm:$0xff] %v4343_v8  ;;  %v1546_v63 = vsel %vm1544_vm2, %v1545_v16, %v1543_v13  ;;  %1787 = vmin.xlane.f32.xlu1 %v4343_v8  ;;  %v2949_v61 = vpop.eup %2948  ;;  %2752 = vmatpush3.bf16.msra.mxu0 %v2241_v23  ;;  %v4380_v59 = vcvt.s32.f32 %v1812_v46  ;;  %v4386_v8 = vsel %vm1443_vm7, %v2947_v1, %v5222_v51  ;;  %v5224_v46 = vld [vmem:[#allocation12_spill] sm:$0xff]  ;;  %vm1549_vm7 = vcmp.eq.f32.partialorder %v4341_v45, inf }
 0x406   : > { %v1610_v19 = vmax.f32 %v1546_v63, 1e-10  ;;  %v1368_v16 = vpop.xlane.xlu1 %1367  ;;  %v2951_v29 = vpop.eup %2950  ;;  %v4375_v13 = vsel %vm1445_vm8, %v2949_v61, %v3775_v48  ;;  %v1538_v63 = vand.u32 2147483648, %v4286_v53  ;;  %vm1558_vm8 = vcmp.eq.f32.partialorder %v4291_v25, 0.0 }
 0x407   : > { %v1369_v41 = vcvt.f32.s32 %v1368_v16  ;;  %v2953_v10 = vpop.eup %2952  ;;  %v1534_v21 = vmul.f32 %v2951_v29, %v4286_v53  ;;  %v1552_v42 = vand.u32 2147483648, %v4341_v45 }
 0x408   : > { %2960 = vrcp.f32 %v1610_v19  ;;  %v1555_v48 = vmul.f32 %v2953_v10, %v4291_v25  ;;  %v5223_v19 = vld [vmem:[#allocation6_spill] sm:$0xff]  ;;  %v1559_v10 = vand.u32 2147483648, %v4291_v25 }
 0x409   : > { %v2955_v14 = vpop.eup %2954  ;;  %v4391_v5 = vadd.s32 %v4191_v34, %v1369_v41  ;;  %v4397_v16 = vsel %vm1444_vm6, %v2945_v37, %v5223_v19  ;;  %v1536_v15 = vsel %vm1535_vm10, %v4286_v53, %v1534_v21  ;;  %1815 = vmin.xlane.f32.xlu1 %v4380_v59  ;;  %v5226_v34 = vld [vmem:[#allocation7_spill] sm:$0xff]  ;;  %v1426_v53 = vcvt.f32.s32 %v4095_v7 }
 0x40a   : > { %v4403_v54 = vsel %vm1448_vm13, %v2955_v14, %v5224_v46  ;;  %v4411_v23 = vadd.f32 %v2947_v1, %v5226_v34  ;;  %v1539_v26 = vsel %vm1537_vm11, %v1538_v63, %v1536_v15  ;;  %v1557_v9 = vsel %vm1556_vm0, %v4291_v25, %v1555_v48  ;;  %v5227_v1 = vld [vmem:[#allocation5_spill] sm:$0xff] }
 0x40b   : > { %5225 = vst [vmem:[#allocation8_spill] sm:$0xff] %v4403_v54  ;;  %vm1453_vm6 = vcmp.eq.s32.totalorder %v3805_v6, %v4391_v5  ;;  %v4419_v11 = vand.u32 4294967168, %v4391_v5  ;;  %v1609_v33 = vmax.f32 %v1539_v26, 1e-10  ;;  %v1560_v21 = vsel %vm1558_vm8, %v1559_v10, %v1557_v9  ;;  %v5228_v10 = vld [vmem:[#allocation14_spill] sm:$0xff]  ;;  %v2859_v54 = vld [vmem:[%s5138_s4] sm:$0xff]  }
 0x40c   : > { %v4425_v29 = vsel %vm1453_vm6, 2147483647, %v3805_v6  ;;  %v4428_v41 = vadd.f32 %v2945_v37, %v5227_v1  ;;  %v1440_v25 = vcvt.f32.s32 %v4099_v2  ;;  %v1612_v63 = vmax.f32 %v1560_v21, 1e-10  ;;  %v5230_v2 = vld [vmem:[#allocation10_spill] sm:$0xff] }
 0x40d   : > { %2962 = vrsqrt.f32 %v4419_v11  ;;  %v1382_v51 = vpop.xlane.xlu0 %1381  ;;  %v2957_v48 = vpop.eup %2956  ;;  %v1840_v46 = vshra.s32 %v4425_v29, 16  ;;  %vm1551_vm13 = vcmp.eq.f32.partialorder %v4341_v45, 0.0  ;;  %v4443_v34 = vadd.f32 %v2949_v61, %v5230_v2  ;;  %v5234_v61 = vld [vmem:[#allocation11_spill] sm:$0xff] }
 0x40e   : > { %2964 = vrcp.f32 %v1609_v33  ;;  %v1383_v19 = vcvt.f32.s32 %v1382_v51  ;;  %v2959_v15 = vpop.eup %2958  ;;  %v4439_v37 = vsel %vm1447_vm14, %v2957_v48, %v5228_v10  ;;  %v5232_v51 = vld [vmem:[#allocation13_spill] sm:$0xff]  ;;  %v4462_v2 = vadd.f32 %v2955_v14, %v5234_v61 }
 0x40f   : > { %5229 = vst [vmem:[#allocation6_spill] sm:$0xff] %v4439_v37  ;;  %2966 = vrcp.f32 %v1612_v63  ;;  %v1396_v7 = vpop.xlane.xlu1 %1395  ;;  %v1548_v26 = vmul.f32 %v2959_v15, %v4341_v45  ;;  %v4449_v21 = vcvt.s32.f32 %v1840_v46  ;;  %v4456_v63 = vadd.f32 %v4303_v55, %v5231_v22  ;;  %v5236_v15 = vld [vmem:[#allocation16_spill] sm:$0xff] }
 0x410   : > { %v4447_v9 = vadd.s32 %v4193_v44, %v1383_v19  ;;  %v1397_v33 = vcvt.f32.s32 %v1396_v7  ;;  %v4459_v10 = vadd.f32 %v2957_v48, %v5232_v51  ;;  %5235 = vst [vmem:[#allocation7_spill] sm:$0xff] %v4462_v2  ;;  %v1427_v22 = vshll.u32 %v1426_v53, 16  ;;  %v5241_v37 = vld [vmem:[#allocation20_spill] sm:$0xff] }
 0x411   : > { %v1550_v19 = vsel %vm1549_vm7, %v4341_v45, %v1548_v26  ;;  %v1410_v48 = vpop.xlane.xlu0 %1409  ;;  %1843 = vmin.xlane.f32.xlu1 %v4449_v21  ;;  %vm1563_vm15 = vcmp.eq.f32.partialorder %v4419_v11, inf  ;;  %vm1565_vm4 = vcmp.eq.f32.partialorder %v4419_v11, 0.0 }
 0x412   : > { %v4451_v1 = vpop.eup %2960  ;;  %5233 = vst [vmem:[#allocation12_spill] sm:$0xff] %v4459_v10  ;;  %vm1454_vm14 = vcmp.eq.s32.totalorder %v3850_v56, %v4447_v9  ;;  %v4477_v55 = vand.u32 4294967168, %v4447_v9  ;;  %v1553_v14 = vsel %vm1551_vm13, %v1552_v42, %v1550_v19  ;;  %v4483_v39 = vadd.s32 %v4359_v40, %v1397_v33 }
 0x413   : > { %v4469_v44 = vsel %vm1450_vm3, %v4451_v1, %v5236_v15  ;;  %v1411_v35 = vcvt.f32.s32 %v1410_v48  ;;  %v4489_v46 = vsel %vm1454_vm14, 2147483647, %v3850_v56  ;;  %v1611_v7 = vmax.f32 %v1553_v14, 1e-10  ;;  %v1424_v26 = vpop.xlane.xlu1 %1423  ;;  %v5254_v56 = vld [vmem:[#allocation22_spill] sm:$0xff] }
 0x414   : > { %5237 = vst [vmem:[#allocation5_spill] sm:$0xff] %v4469_v44  ;;  %2968 = vrsqrt.f32 %v4477_v55  ;;  %vm1455_vm3 = vcmp.eq.s32.totalorder %v3872_v18, %v4483_v39  ;;  %v4495_v45 = vand.u32 4294967168, %v4483_v39  ;;  %v1425_v42 = vcvt.f32.s32 %v1424_v26 }
 0x415   : > { %v4498_v40 = vadd.s32 %v4361_v24, %v1411_v35  ;;  %2970 = vrcp.f32 %v1611_v7  ;;  %v4504_v33 = vsel %vm1455_vm3, 2147483647, %v3872_v18  ;;  %v1854_v51 = vshra.s32 %v4489_v46, 16 }
 0x416   : > { %5238 = vst [vmem:[#allocation14_spill] sm:$0xff] %v4504_v33  ;;  %v1438_v53 = vpop.xlane.xlu0 %1437  ;;  %v1441_v15 = vshll.u32 %v1440_v25, 16  ;;  %2972 = vrsqrt.f32 %v4495_v45  ;;  %v1566_v48 = vand.u32 2147483648, %v4419_v11  ;;  %v4517_v35 = vadd.s32 %v1427_v22, %v1425_v42  ;;  %v5239_v25 = vld [vmem:[#allocation18_spill] sm:$0xff] }
 0x417   : > { %v2963_v61 = vpop.eup %2962  ;;  %v4515_v14 = vand.u32 4294967168, %v4498_v40  ;;  %v4528_v44 = vcvt.s32.f32 %v1854_v51  ;;  %v1439_v10 = vcvt.f32.s32 %v1438_v53  ;;  %vm1456_vm2 = vcmp.eq.s32.totalorder %v3890_v12, %v4498_v40  ;;  %v5264_v40 = vld [vmem:[#allocation26_spill] sm:$0xff] }
 0x418   : > { %v4510_v24 = vpop.eup %2964  ;;  %v1562_v19 = vmul.f32 %v2963_v61, %v4419_v11  ;;  %v1868_v61 = vshra.s32 %v4504_v33, 16  ;;  %v4548_v4 = vand.u32 4294967168, %v4517_v35  ;;  %vm1572_vm11 = vcmp.eq.f32.partialorder %v4477_v55, 0.0 }
 0x419   : > { %v4519_v7 = vpop.eup %2966  ;;  %v4526_v26 = vsel %vm1449_vm9, %v4510_v24, %v5239_v25  ;;  %2974 = vrsqrt.f32 %v4515_v14  ;;  %vm1457_vm9 = vcmp.eq.s32.totalorder %v3907_v58, %v4517_v35  ;;  %1857 = vmin.xlane.f32.xlu0 %v4528_v44  ;;  %v1573_v25 = vand.u32 2147483648, %v4477_v55  ;;  %v5267_v35 = vld [vmem:[#allocation29_spill] sm:$0xff] }
 0x41a   : > { %5240 = vst [vmem:[#allocation10_spill] sm:$0xff] %v4526_v26  ;;  %v4536_v22 = vsel %vm1452_vm12, %v4519_v7, %v5241_v37  ;;  %v1564_v42 = vsel %vm1563_vm15, %v4419_v11, %v1562_v19  ;;  %v4554_v52 = vsel %vm1457_vm9, 2147483647, %v3907_v58  ;;  %v4556_v37 = vadd.s32 %v1441_v15, %v1439_v10 }
 0x41b   : > { %5242 = vst [vmem:[#allocation9_spill] sm:$0xff] %v4536_v22  ;;  %v1567_v27 = vsel %vm1565_vm4, %v1566_v48, %v1564_v42  ;;  %5243 = vst [vmem:[#allocation13_spill] sm:$0xff] %v4554_v52  ;;  %v4558_v51 = vcvt.s32.f32 %v1868_v61  ;;  %v4564_v11 = vsel %vm1456_vm2, 2147483647, %v3890_v12  ;;  %v1896_v53 = vshra.s32 %v4554_v52, 16 }
 0x41c   : > { %v1613_v62 = vmax.f32 %v1567_v27, 1e-10  ;;  %5244 = vst [vmem:[#allocation11_spill] sm:$0xff] %v4564_v11  ;;  %vm1570_vm12 = vcmp.eq.f32.partialorder %v4477_v55, inf  ;;  %vm1458_vm10 = vcmp.eq.s32.totalorder %v3941_v17, %v4556_v37  ;;  %v4573_v10 = vand.u32 4294967168, %v4556_v37 }
 0x41d   : > { %1871 = vmin.xlane.f32.xlu1 %v4558_v51  ;;  %v1882_v61 = vshra.s32 %v4564_v11, 16  ;;  %v4578_v42 = vcvt.s32.f32 %v1896_v53  ;;  %v4584_v27 = vsel %vm1458_vm10, 2147483647, %v3941_v17  ;;  %vm1577_vm0 = vcmp.eq.f32.partialorder %v4495_v45, inf }
 0x41e   : > { %v2969_v19 = vpop.eup %2968  ;;  %2976 = vrcp.f32 %v1613_v62  ;;  %5245 = vst [vmem:[#allocation16_spill] sm:$0xff] %v4584_v27  ;;  %v1580_v2 = vand.u32 2147483648, %v4495_v45  ;;  %vm1579_vm8 = vcmp.eq.f32.partialorder %v4495_v45, 0.0  ;;  %vm1584_vm7 = vcmp.eq.f32.partialorder %v4515_v14, inf }
 0x41f   : > { %v1569_v48 = vmul.f32 %v2969_v19, %v4477_v55  ;;  %2978 = vrsqrt.f32 %v4548_v4  ;;  %v2971_v15 = vpop.eup %2970  ;;  %v4604_v3 = vcvt.s32.f32 %v1882_v61  ;;  %vm1586_vm13 = vcmp.eq.f32.partialorder %v4515_v14, 0.0 }
 0x420   : > { %v2973_v62 = vpop.eup %2972  ;;  %v4590_v19 = vsel %vm1451_vm5, %v2971_v15, %v3959_v30  ;;  %2980 = vrsqrt.f32 %v4573_v10  ;;  %vm2233_vm5 = vcmask 64512   ;;  %vm1591_vm15 = vcmp.eq.f32.partialorder %v4548_v4, inf }
 0x421   : > { %5246 = vst [vmem:[#allocation18_spill] sm:$0xff] %v4590_v19  ;;  %v1571_v22 = vsel %vm1570_vm12, %v4477_v55, %v1569_v48  ;;  %v1576_v26 = vmul.f32 %v2973_v62, %v4495_v45  ;;  %1899 = vmin.xlane.f32.xlu1 %v4578_v42  ;;  %v1910_v55 = vshra.s32 %v4584_v27, 16  ;;  %2753 = vmatprep.mubr.msk.bf16.mxu0 %vm2233_vm5, %v2859_v54  ;;  %v1587_v19 = vand.u32 2147483648, %v4515_v14  ;;  %v5247_v54 = vld [vmem:[#allocation17_spill] sm:$0xff] }
 0x422   : > { %v1574_v53 = vsel %vm1572_vm11, %v1573_v25, %v1571_v22  ;;  %1885 = vmin.xlane.f32.xlu0 %v4604_v3  ;;  %2754 = vmatmul.mubr.msk.bf16.vlgmr.msra.gmra.mrb[16].mxu0 %vm2233_vm5, %v2860_v38  ;;  %vm1593_vm4 = vcmp.eq.f32.partialorder %v4548_v4, 0.0  ;;  %vm1600_vm12 = vcmp.eq.f32.partialorder %v4573_v10, 0.0 }
 0x423   : > { %v1614_v30 = vmax.f32 %v1574_v53, 1e-10  ;;  %v2975_v22 = vpop.eup %2974  ;;  %v1578_v48 = vsel %vm1577_vm0, %v4495_v45, %v1576_v26  ;;  %v4613_v61 = vcvt.s32.f32 %v1910_v55  ;;  %v5248_v45 = vld [vmem:[#allocation15_spill] sm:$0xff] }
 0x424   : > { %v1581_v25 = vsel %vm1579_vm8, %v1580_v2, %v1578_v48  ;;  %v1583_v62 = vmul.f32 %v2975_v22, %v4515_v14  ;;  %v4622_v2 = vadd.f32 %v4510_v24, %v5247_v54  ;;  %v4629_v22 = vadd.f32 %v2971_v15, %v3947_v36  ;;  %v5249_v48 = vld [vmem:[#allocation19_spill] sm:$0xff] }
 0x425   : > { %2982 = vrcp.f32 %v1614_v30  ;;  %v1615_v53 = vmax.f32 %v1581_v25, 1e-10  ;;  %v4626_v30 = vadd.f32 %v4451_v1, %v5248_v45  ;;  %v4633_v25 = vadd.f32 %v4519_v7, %v5249_v48  ;;  %v5252_v48 = vld [vmem:[#allocation23_spill] sm:$0xff] }
 0x426   : > { %v1585_v26 = vsel %vm1584_vm7, %v4515_v14, %v1583_v62  ;;  %1913 = vmin.xlane.f32.xlu0 %v4613_v61  ;;  %v1594_v7 = vand.u32 2147483648, %v4548_v4 }
 0x427   : > { %2984 = vrcp.f32 %v1615_v53  ;;  %v1588_v38 = vsel %vm1586_vm13, %v1587_v19, %v1585_v26 }
 0x428   : > { %v2977_v55 = vpop.eup %2976  ;;  %v1616_v14 = vmax.f32 %v1588_v38, 1e-10 }
 0x429   : > { %v2979_v62 = vpop.eup %2978  ;;  %v4639_v24 = vsel %vm1453_vm6, %v2977_v55, %v3977_v20  ;;  %v4643_v1 = vadd.f32 %v2977_v55, %v3970_v32  ;;  %vm1598_vm6 = vcmp.eq.f32.partialorder %v4573_v10, inf  ;;  %v1601_v32 = vand.u32 2147483648, %v4573_v10 }
 0x42a   : > { %v1590_v36 = vmul.f32 %v2979_v62, %v4548_v4  ;;  %v2981_v15 = vpop.eup %2980  ;;  %2986 = vrcp.f32 %v1616_v14 }
 0x42b   : > { %v1597_v6 = vmul.f32 %v2981_v15, %v4573_v10  ;;  %v5258_v15 = vld [vmem:[#allocation25_spill] sm:$0xff] }
 0x42c   : > { %v1592_v19 = vsel %vm1591_vm15, %v4548_v4, %v1590_v36 }
 0x42d   : > { %v1595_v20 = vsel %vm1593_vm4, %v1594_v7, %v1592_v19  ;;  %v1599_v53 = vsel %vm1598_vm6, %v4573_v10, %v1597_v6  ;;  %v5262_v19 = vld [vmem:[#allocation27_spill] sm:$0xff] }
 0x42e   : > { %v1617_v5 = vmax.f32 %v1595_v20, 1e-10  ;;  %v1602_v54 = vsel %vm1600_vm12, %v1601_v32, %v1599_v53  ;;  %v5266_v20 = vld [vmem:[#allocation28_spill] sm:$0xff] }
 0x42f   : > { %v2983_v26 = vpop.eup %2982  ;;  %v1618_v4 = vmax.f32 %v1602_v54, 1e-10  ;;  %v1713_v32 = vand.u32 65535, %v5266_v20 }
 0x430   : > { %v4659_v45 = vsel %vm1454_vm14, %v2983_v26, %v3989_v28  ;;  %2988 = vrcp.f32 %v1617_v5  ;;  %v4662_v55 = vadd.f32 %v2983_v26, %v3983_v31  ;;  %v5256_v31 = vld [vmem:[#allocation21_spill] sm:$0xff]  ;;  %v5268_v26 = vld [vmem:[#allocation30_spill] sm:$0xff] }
 0x431   : > { %v2985_v38 = vpop.eup %2984  ;;  %2990 = vrcp.f32 %v1618_v4  ;;  %v1715_v58 = vcvt.s32.f32 %v1713_v32  ;;  %v1699_v54 = vand.u32 65535, %v5268_v26  ;;  %v5269_v4 = vld [vmem:[#allocation31_spill] sm:$0xff] }
 0x432   : > { %5250 = vst [vmem:[#allocation20_spill] sm:$0xff] %v4662_v55  ;;  %v4668_v10 = vsel %vm1455_vm3, %v2985_v38, %v4005_v43  ;;  %v4671_v62 = vadd.f32 %v2985_v38, %v5252_v48  ;;  %v5260_v43 = vld [vmem:[#allocation24_spill] sm:$0xff]  ;;  %v1741_v38 = vand.u32 65535, %v5269_v4 }
 0x433   : > { %5251 = vst [vmem:[#allocation17_spill] sm:$0xff] %v4668_v10  ;;  %v1701_v37 = vcvt.s32.f32 %v1699_v54  ;;  %v5270_v48 = vld [vmem:[#allocation32_spill] sm:$0xff] }
 0x434   : > { %5253 = vst [vmem:[#allocation15_spill] sm:$0xff] %v4671_v62  ;;  %v2987_v14 = vpop.eup %2986 }
 0x435   : > { %v4677_v28 = vsel %vm1456_vm2, %v2987_v14, %v5254_v56  ;;  %v4680_v9 = vadd.f32 %v2987_v14, %v5256_v31  ;;  %v1743_v56 = vcvt.s32.f32 %v1741_v38 }
 0x436   : > { %5255 = vst [vmem:[#allocation19_spill] sm:$0xff] %v4677_v28 }
 0x437   : > { %5257 = vst [vmem:[#allocation23_spill] sm:$0xff] %v4680_v9 }
 0x43a   : > { %v2989_v36 = vpop.eup %2988 }
 0x43b   : > { %v4686_v18 = vsel %vm1457_vm9, %v2989_v36, %v5258_v15  ;;  %v4689_v39 = vadd.f32 %v2989_v36, %v5260_v43  ;;  %v2991_v7 = vpop.eup %2990  ;;  %v5271_v36 = vld [vmem:[#allocation33_spill] sm:$0xff]  ;;  %v5272_v43 = vld [vmem:[#allocation34_spill] sm:$0xff] }
 0x43c   : > { %5259 = vst [vmem:[#allocation22_spill] sm:$0xff] %v4686_v18  ;;  %v4695_v12 = vsel %vm1458_vm10, %v2991_v7, %v5262_v19  ;;  %v4698_v6 = vadd.f32 %v2991_v7, %v5264_v40  ;;  %v1727_v7 = vand.u32 65535, %v5272_v43  ;;  %v5273_v19 = vld [vmem:[#allocation35_spill] sm:$0xff] }
 0x43d   : > { %5261 = vst [vmem:[#allocation21_spill] sm:$0xff] %v4689_v39  ;;  %5263 = vst [vmem:[#allocation25_spill] sm:$0xff] %v4695_v12  ;;  %v1769_v40 = vand.u32 65535, %v5273_v19 }
 0x43e   : > { %5265 = vst [vmem:[#allocation24_spill] sm:$0xff] %v4698_v6 }
 0x43f   : > { %v1771_v38 = vcvt.s32.f32 %v1769_v40 }
 0x46e   : > { %v4701_v5 = vpop.xlane.xlu0 %1717 }
 0x46f   : > { %vm1719_vm14 = vcmp.eq.f32.partialorder %v5267_v35, %v4701_v5  ;;  %v5274_v35 = vld [vmem:[#allocation36_spill] sm:$0xff] }
 0x470   : > { %v1720_v53 = vsel %vm1719_vm14, %v1715_v58, inf  ;;  %v1729_v58 = vcvt.s32.f32 %v1727_v7 }
 0x471   : > { %1721 = vmin.xlane.f32.xlu0 %v1720_v53 }
 0x472   : > { %v4707_v17 = vpop.xlane.xlu1 %1703 }
 0x473   : > { %vm1705_vm3 = vcmp.eq.f32.partialorder %v5270_v48, %v4707_v17 }
 0x474   : > { %v1706_v31 = vsel %vm1705_vm3, %v1701_v37, inf  ;;  %v5275_v37 = vld [vmem:[#allocation37_spill] sm:$0xff] }
 0x475   : > { %1707 = vmin.xlane.f32.xlu1 %v1706_v31  ;;  %v1797_v31 = vand.u32 65535, %v4261_v50 }
 0x476   : > { %v4711_v14 = vpop.xlane.xlu0 %1745 }
 0x477   : > { %vm1747_vm2 = vcmp.eq.f32.partialorder %v5271_v36, %v4711_v14 }
 0x478   : > { %v1748_v15 = vsel %vm1747_vm2, %v1743_v56, inf  ;;  %v1755_v56 = vand.u32 65535, %v4255_v60 }
 0x479   : > { %1749 = vmin.xlane.f32.xlu0 %v1748_v15 }
 0x47a   : > { %v1757_v15 = vcvt.s32.f32 %v1755_v56  ;;  %v5276_v56 = vld [vmem:[#allocation39_spill] sm:$0xff] }
 0x47c   : > { %v4717_v32 = vpop.xlane.xlu1 %1731 }
 0x47d   : > { %vm1733_vm9 = vcmp.eq.f32.partialorder %v5274_v35, %v4717_v32 }
 0x47e   : > { %v1734_v53 = vsel %vm1733_vm9, %v1729_v58, inf  ;;  %v1799_v58 = vcvt.s32.f32 %v1797_v31 }
 0x47f   : > { %1735 = vmin.xlane.f32.xlu1 %v1734_v53  ;;  %v1783_v53 = vand.u32 65535, %v4319_v0 }
 0x480   : > { %v4721_v54 = vpop.xlane.xlu0 %1773 }
 0x481   : > { %vm1775_vm10 = vcmp.eq.f32.partialorder %v5275_v37, %v4721_v54 }
 0x482   : > { %v1776_v48 = vsel %vm1775_vm10, %v1771_v38, inf  ;;  %v1825_v38 = vand.u32 65535, %v4325_v57 }
 0x483   : > { %1777 = vmin.xlane.f32.xlu0 %v1776_v48  ;;  %v1785_v48 = vcvt.s32.f32 %v1783_v53 }
 0x484   : > { %v1827_v31 = vcvt.s32.f32 %v1825_v38 }
 0x485   : > { %v4727_v36 = vpop.xlane.xlu1 %1759 }
 0x486   : > { %vm1761_vm11 = vcmp.eq.f32.partialorder %v4275_v49, %v4727_v36  ;;  %v1766_v39 = vcvt.f32.s32 %v4727_v36 }
 0x487   : > { %v4731_v7 = vpop.xlane.xlu0 %1801  ;;  %v1762_v35 = vsel %vm1761_vm11, %v1757_v15, inf  ;;  %v5277_v15 = vld [vmem:[#allocation40_spill] sm:$0xff] }
 0x488   : > { %vm1803_vm0 = vcmp.eq.f32.partialorder %v4281_v47, %v4731_v7  ;;  %1763 = vmin.xlane.f32.xlu1 %v1762_v35  ;;  %v1811_v12 = vand.u32 65535, %v5277_v15  ;;  %v5278_v47 = vld [vmem:[#allocation41_spill] sm:$0xff]  ;;  %v1767_v36 = vshll.u32 %v1766_v39, 16 }
 0x489   : > { %v1804_v40 = vsel %vm1803_vm0, %v1799_v58, inf }
 0x48a   : > { %1805 = vmin.xlane.f32.xlu0 %v1804_v40  ;;  %v1813_v40 = vcvt.s32.f32 %v1811_v12 }
 0x491   : > { %v4741_v49 = vpop.xlane.xlu0 %1829 }
 0x492   : > { %v4737_v37 = vpop.xlane.xlu1 %1787  ;;  %vm1831_vm7 = vcmp.eq.f32.partialorder %v5278_v47, %v4741_v49  ;;  %v1867_v47 = vand.u32 65535, %v4504_v33 }
 0x493   : > { %vm1789_vm8 = vcmp.eq.f32.partialorder %v5276_v56, %v4737_v37  ;;  %v1832_v58 = vsel %vm1831_vm7, %v1827_v31, inf  ;;  %v1839_v56 = vand.u32 65535, %v4425_v29 }
 0x494   : > { %v1790_v18 = vsel %vm1789_vm8, %v1785_v48, inf  ;;  %1833 = vmin.xlane.f32.xlu0 %v1832_v58 }
 0x495   : > { %1791 = vmin.xlane.f32.xlu1 %v1790_v18  ;;  %v1841_v6 = vcvt.s32.f32 %v1839_v56  ;;  %v1853_v18 = vand.u32 65535, %v4489_v46 }
 0x496   : > { %v4746_v35 = vpop.xlane.xlu1 %1815 }
 0x497   : > { %vm1817_vm13 = vcmp.eq.f32.partialorder %v4380_v59, %v4746_v35  ;;  %v1855_v12 = vcvt.s32.f32 %v1853_v18 }
 0x498   : > { %v1818_v53 = vsel %vm1817_vm13, %v1813_v40, inf  ;;  %v1869_v40 = vcvt.s32.f32 %v1867_v47  ;;  %v1909_v47 = vand.u32 65535, %v4584_v27  ;;  %v1710_v27 = vcvt.f32.s32 %v4707_v17  ;;  %v2416_v17 = vld [vmem:[%s5140_s6 + $0x8] sm:$0xff] }
 0x499   : > { %1819 = vmin.xlane.f32.xlu1 %v1818_v53  ;;  %v1895_v53 = vand.u32 65535, %v4554_v52 }
 0x49e   : > { %v4751_v38 = vpop.xlane.xlu1 %1843 }
 0x49f   : > { %vm1845_vm15 = vcmp.eq.f32.partialorder %v4449_v21, %v4751_v38 }
 0x4a0   : > { %v1846_v48 = vsel %vm1845_vm15, %v1841_v6, inf  ;;  %v1881_v6 = vand.u32 65535, %v4564_v11 }
 0x4a1   : > { %1847 = vmin.xlane.f32.xlu1 %v1846_v48  ;;  %v1897_v48 = vcvt.s32.f32 %v1895_v53  ;;  %v1724_v53 = vcvt.f32.s32 %v4701_v5 }
 0x4a2   : > { %v1883_v18 = vcvt.s32.f32 %v1881_v6 }
 0x4a6   : > { %v4756_v31 = vpop.xlane.xlu0 %1857 }
 0x4a7   : > { %vm1859_vm4 = vcmp.eq.f32.partialorder %v4528_v44, %v4756_v31 }
 0x4a8   : > { %v1860_v59 = vsel %vm1859_vm4, %v1855_v12, inf }
 0x4a9   : > { %1861 = vmin.xlane.f32.xlu0 %v1860_v59 }
 0x4aa   : > { %v4761_v58 = vpop.xlane.xlu1 %1871 }
 0x4ab   : > { %vm1873_vm6 = vcmp.eq.f32.partialorder %v4558_v51, %v4761_v58 }
 0x4ac   : > { %v1874_v21 = vsel %vm1873_vm6, %v1869_v40, inf  ;;  %v1911_v40 = vcvt.s32.f32 %v1909_v47  ;;  %v2861_v47 = vld [vmem:[%s5139_s5] sm:$0xff]  }
 0x4ad   : > { %1875 = vmin.xlane.f32.xlu1 %v1874_v21  ;;  %2759 = vmatprep.mubr.msk.bf16.mxu0 %vm2233_vm5, %v2861_v47  ;;  %v3168_v47 = vmov 0  }
 0x4ae   : > { %v4767_v56 = vpop.xlane.xlu1 %1899  ;;  %2857 = vset.pattern.permute.xlu1 %v3168_v47  ;;  %2858 = vset.pattern.permute.xlu0 %v3168_v47 }
 0x4af   : > { %vm1901_vm12 = vcmp.eq.f32.partialorder %v4578_v42, %v4767_v56  ;;  %v4771_v44 = vpop.xlane.xlu0 %1885 }
 0x4b0   : > { %v1902_v12 = vsel %vm1901_vm12, %v1897_v48, inf  ;;  %vm1887_vm14 = vcmp.eq.f32.partialorder %v4604_v3, %v4771_v44  ;;  %v1725_v3 = vshll.u32 %v1724_v53, 16 }
 0x4b1   : > { %1903 = vmin.xlane.f32.xlu1 %v1902_v12  ;;  %v1888_v51 = vsel %vm1887_vm14, %v1883_v18, inf  ;;  %v418_v12 = vld [vmem:[%s410_s15] sm:$0xf]  ;;  %s2532_s15 = sshll.u32 %s392_s29, 4  ;;  %s5081_s15 = int_to_ptr.vmem [resolvable:$true] %s2532_s15 }
 0x4b2   : > { %1889 = vmin.xlane.f32.xlu0 %v1888_v51  ;;  %2796 = vmatprep.subr.msk.bf16.mxu0 %vm439_vm1, %v418_v12  ;;  %v2315_v5 = vsel %vm439_vm1, %v418_v12, 0  ;;  %v2862_v51 = vld [vmem:[%s5139_s5 + $0x8] sm:$0xff]   ;;  %v1752_v12 = vcvt.f32.s32 %v4711_v14  ;;  %s3088_s25 = scalar_lea.vmem %s5081_s15, 256  ;;  %p3095_p1 = scmp.lt.s32.totalorder %s5081_s15, %s3093_s26 }
 0x4b3   : > { %v4776_v59 = vpop.xlane.xlu0 %1913  ;;  %2758 = vmatpush3.bf16.msra.mxu0 %v2315_v5  ;;  %p3089_p12 = scmp.ne.s32.totalorder %s5081_s15, %s3088_s25  ;;  %p3096_p2 = scmp.lt.s32.totalorder %s3094_s28, %s3088_s25 }
 0x4b4   : > { %vm1915_vm3 = vcmp.eq.f32.partialorder %v4613_v61, %v4776_v59  ;;  %v1753_v14 = vshll.u32 %v1752_v12, 16 }
 0x4b5   : > { %v1916_v42 = vsel %vm1915_vm3, %v1911_v40, inf  ;;  %p3090_p13 = pnand %p3089_p12, %p3264_p4  ;;  %p3097_p3 = por %p3096_p2, %p3095_p1 }
 0x4b6   : > { %1917 = vmin.xlane.f32.xlu0 %v1916_v42  ;;  %2760 = vmatmul.mubr.msk.bf16.vlgmr.msra.gmra.mrb[20].mxu0 %vm2233_vm5, %v2862_v51  ;;  %v1711_v42 = vshll.u32 %v1710_v27, 16 }
 0x4b7   : > { %p3091_p0 = pneg %p3090_p13 }
 0x4b9   : > { %p3098_p5 = pnand %p3097_p3, %p3091_p0 }
 0x4cc   : > { %2426 = vperm.xlu0 %2858, %v2416_v17  }
 0x4f5   : > { %v4781_v6 = vpop.f32.mrb[16].mxu0 }
 0x4f6   : > { %5279 = vst [vmem:[#allocation27_spill] sm:$0xff] %v4781_v6  ;;  %v2277_v18 = vpop.f32.mrb[17].mxu0 }
 0x4f7   : > { %v4790_v61 = vpop.f32.mrb[18].mxu0 }
 0x4f8   : > { %5280 = vst [vmem:[#allocation26_spill] sm:$0xff] %v4790_v61  ;;  %v2280_v53 = vpop.f32.mrb[19].mxu0 }
 0x4fe   : > { %v1722_v21 = vpop.xlane.xlu0 %1721 }
 0x4ff   : > { %v1723_v48 = vcvt.f32.s32 %v1722_v21  ;;  %v2292_v21 = vpack.c.bf16 %v2280_v53, %v2277_v18  ;;  %v2417_v53 = vld [vmem:[%s5140_s6 + $0x10] sm:$0xff] }
 0x501   : > { %v4797_v40 = vadd.s32 %v1725_v3, %v1723_v48  ;;  %2779 = vmatprep.mubr.bf16.mxu1 %v2292_v21  ;;  %v2415_v48 = vld [vmem:[%s5140_s6] sm:$0xff]  ;;  %v1738_v21 = vcvt.f32.s32 %v4717_v32 }
 0x502   : > { %v1708_v3 = vpop.xlane.xlu1 %1707  ;;  %2421 = vperm.xlu1 %2857, %v2415_v48  }
 0x503   : > { %v1940_v52 = vand.u32 4294967168, %v4797_v40  ;;  %v1709_v5 = vcvt.f32.s32 %v1708_v3  ;;  %vm1924_vm0 = vcmp.eq.s32.totalorder %v5266_v20, %v4797_v40 }
 0x505   : > { %2992 = vrsqrt.f32 %v1940_v52  ;;  %v4812_v51 = vadd.s32 %v1711_v42, %v1709_v5  ;;  %v1780_v42 = vcvt.f32.s32 %v4721_v54  ;;  %v1739_v5 = vshll.u32 %v1738_v21, 16 }
 0x506   : > { %v1750_v6 = vpop.xlane.xlu0 %1749  ;;  %2431 = vperm.xlu1 %2857, %v2417_v53   ;;  %vm1980_vm1 = vcmp.eq.f32.partialorder %v1940_v52, inf  ;;  %v1983_v32 = vand.u32 2147483648, %v1940_v52  ;;  %v2451_v53 = vld [vmem:[%s5142_s8] sm:$0xff]  ;;  %vm1982_vm5 = vcmp.eq.f32.partialorder %v1940_v52, 0.0  ;;  %v1808_v21 = vcvt.f32.s32 %v4731_v7 }
 0x507   : > { %v1751_v18 = vcvt.f32.s32 %v1750_v6  ;;  %v1939_v3 = vand.u32 4294967168, %v4812_v51  ;;  %v2418_v6 = vld [vmem:[%s5140_s6 + $0x18] sm:$0xff]  ;;  %v1781_v9 = vshll.u32 %v1780_v42, 16  ;;  %vm1923_vm4 = vcmp.eq.s32.totalorder %v5268_v26, %v4812_v51 }
 0x508   : > { %v1809_v42 = vshll.u32 %v1808_v21, 16 }
 0x509   : > { %v4817_v27 = vadd.s32 %v1753_v14, %v1751_v18  ;;  %2994 = vrsqrt.f32 %v1939_v3  ;;  %vm1973_vm2 = vcmp.eq.f32.partialorder %v1939_v3, inf  ;;  %vm1975_vm9 = vcmp.eq.f32.partialorder %v1939_v3, 0.0 }
 0x50a   : > { %2436 = vperm.xlu1 %2857, %v2418_v6  }
 0x50b   : > { %v1942_v47 = vand.u32 4294967168, %v4817_v27  ;;  %vm1926_vm6 = vcmp.eq.s32.totalorder %v5269_v4, %v4817_v27 }
 0x50c   : > { %v1736_v12 = vpop.xlane.xlu1 %1735 }
 0x50d   : > { %2996 = vrsqrt.f32 %v1942_v47  ;;  %v1737_v17 = vcvt.f32.s32 %v1736_v12  ;;  %vm1994_vm10 = vcmp.eq.f32.partialorder %v1942_v47, inf  ;;  %vm1996_vm11 = vcmp.eq.f32.partialorder %v1942_v47, 0.0 }
 0x50e   : > { %2455 = vperm.xlu1 %2857, %v2451_v53  }
 0x50f   : > { %v2993_v48 = vpop.eup %2992  ;;  %v4826_v18 = vadd.s32 %v1739_v5, %v1737_v17  ;;  %v2452_v5 = vld [vmem:[%s5142_s8 + $0x8] sm:$0xff] }
 0x510   : > { %v1979_v14 = vmul.f32 %v2993_v48, %v1940_v52  ;;  %v1778_v61 = vpop.xlane.xlu0 %1777 }
 0x511   : > { %v1779_v54 = vcvt.f32.s32 %v1778_v61  ;;  %v1941_v6 = vand.u32 4294967168, %v4826_v18 }
 0x512   : > { %v1981_v28 = vsel %vm1980_vm1, %v1940_v52, %v1979_v14  ;;  %2460 = vperm.xlu1 %2857, %v2452_v5   ;;  %v1976_v14 = vand.u32 2147483648, %v1939_v3 }
 0x513   : > { %v1984_v12 = vsel %vm1982_vm5, %v1983_v32, %v1981_v28  ;;  %v4834_v11 = vadd.s32 %v1781_v9, %v1779_v54  ;;  %2998 = vrsqrt.f32 %v1941_v6  ;;  %v2995_v61 = vpop.eup %2994  ;;  %v1794_v28 = vcvt.f32.s32 %v4737_v37 }
 0x514   : > { %v2084_v48 = vmax.f32 %v1984_v12, 1e-10  ;;  %v1972_v17 = vmul.f32 %v2995_v61, %v1939_v3  ;;  %vm1987_vm8 = vcmp.eq.f32.partialorder %v1941_v6, inf  ;;  %vm1989_vm7 = vcmp.eq.f32.partialorder %v1941_v6, 0.0 }
 0x515   : > { %v4840_v52 = vand.u32 4294967168, %v4834_v11  ;;  %v1764_v9 = vpop.xlane.xlu1 %1763  ;;  %vm1925_vm5 = vcmp.eq.s32.totalorder %v5272_v43, %v4826_v18  ;;  %v5282_v18 = vld [vmem:[#allocation8_spill] sm:$0xff] }
 0x516   : > { %3000 = vrcp.f32 %v2084_v48  ;;  %v1765_v53 = vcvt.f32.s32 %v1764_v9  ;;  %v1974_v12 = vsel %vm1973_vm2, %v1939_v3, %v1972_v17  ;;  %v1997_v48 = vand.u32 2147483648, %v1942_v47 }
 0x517   : > { %v2997_v7 = vpop.eup %2996  ;;  %3002 = vrsqrt.f32 %v4840_v52  ;;  %v1806_v54 = vpop.xlane.xlu0 %1805  ;;  %v1977_v39 = vsel %vm1975_vm9, %v1976_v14, %v1974_v12  ;;  %v1795_v9 = vshll.u32 %v1794_v28, 16  ;;  %v1822_v28 = vcvt.f32.s32 %v4746_v35 }
 0x518   : > { %v1993_v32 = vmul.f32 %v2997_v7, %v1942_v47  ;;  %v1807_v62 = vcvt.f32.s32 %v1806_v54  ;;  %v4844_v10 = vadd.s32 %v1767_v36, %v1765_v53  ;;  %v2083_v37 = vmax.f32 %v1977_v39, 1e-10 }
 0x519   : > { %v1836_v7 = vcvt.f32.s32 %v4741_v49  ;;  %vm2008_vm13 = vcmp.eq.f32.partialorder %v4840_v52, inf  ;;  %vm2010_vm15 = vcmp.eq.f32.partialorder %v4840_v52, 0.0  ;;  %vm1928_vm2 = vcmp.eq.s32.totalorder %v5273_v19, %v4834_v11  ;;  %v5283_v11 = vld [vmem:[#allocation7_spill] sm:$0xff] }
 0x51a   : > { %v1995_v21 = vsel %vm1994_vm10, %v1942_v47, %v1993_v32  ;;  %v4846_v33 = vadd.s32 %v1809_v42, %v1807_v62  ;;  %v4849_v5 = vand.u32 4294967168, %v4844_v10  ;;  %3004 = vrcp.f32 %v2083_v37 }
 0x51b   : > { %v1998_v61 = vsel %vm1996_vm11, %v1997_v48, %v1995_v21  ;;  %v1990_v62 = vand.u32 2147483648, %v1941_v6  ;;  %v1837_v32 = vshll.u32 %v1836_v7, 16  ;;  %v1823_v37 = vshll.u32 %v1822_v28, 16 }
 0x51c   : > { %v2086_v55 = vmax.f32 %v1998_v61, 1e-10  ;;  %v4853_v3 = vand.u32 4294967168, %v4846_v33  ;;  %vm2001_vm12 = vcmp.eq.f32.partialorder %v4849_v5, inf  ;;  %vm2003_vm14 = vcmp.eq.f32.partialorder %v4849_v5, 0.0 }
 0x51d   : > { %v2999_v17 = vpop.eup %2998  ;;  %vm1927_vm9 = vcmp.eq.s32.totalorder %v4255_v60, %v4844_v10 }
 0x51e   : > { %3006 = vrcp.f32 %v2086_v55  ;;  %v1986_v36 = vmul.f32 %v2999_v17, %v1941_v6  ;;  %vm2022_vm3 = vcmp.eq.f32.partialorder %v4853_v3, inf  ;;  %vm2024_vm1 = vcmp.eq.f32.partialorder %v4853_v3, 0.0 }
 0x51f   : > { %3008 = vrsqrt.f32 %v4849_v5 }
 0x520   : > { %v3001_v47 = vpop.eup %3000  ;;  %3010 = vrsqrt.f32 %v4853_v3  ;;  %v1988_v55 = vsel %vm1987_vm8, %v1941_v6, %v1986_v36  ;;  %v1850_v36 = vcvt.f32.s32 %v4751_v38  ;;  %v2004_v38 = vand.u32 2147483648, %v4849_v5 }
 0x521   : > { %v2132_v49 = vsel %vm1924_vm0, %v3001_v47, %v4397_v16  ;;  %v2148_v42 = vadd.f32 %v3001_v47, %v4428_v41  ;;  %v3003_v14 = vpop.eup %3002  ;;  %v1991_v54 = vsel %vm1989_vm7, %v1990_v62, %v1988_v55  ;;  %v1834_v12 = vpop.xlane.xlu0 %1833  ;;  %v2011_v16 = vand.u32 2147483648, %v4840_v52 }
 0x522   : > { %v1792_v53 = vpop.xlane.xlu1 %1791  ;;  %v2007_v20 = vmul.f32 %v3003_v14, %v4840_v52  ;;  %v2085_v48 = vmax.f32 %v1991_v54, 1e-10  ;;  %v1835_v39 = vcvt.f32.s32 %v1834_v12  ;;  %v1864_v62 = vcvt.f32.s32 %v4756_v31 }
 0x523   : > { %v1793_v40 = vcvt.f32.s32 %v1792_v53  ;;  %3012 = vrcp.f32 %v2148_v42  ;;  %vm1930_vm8 = vcmp.eq.s32.totalorder %v4261_v50, %v4846_v33 }
 0x524   : > { %v2009_v41 = vsel %vm2008_vm13, %v4840_v52, %v2007_v20  ;;  %3014 = vrcp.f32 %v2085_v48  ;;  %v4869_v21 = vadd.s32 %v1837_v32, %v1835_v39  ;;  %v3005_v47 = vpop.eup %3004  ;;  %v5281_v32 = vld [vmem:[#allocation38_spill] sm:$0xff] }
 0x525   : > { %v4867_v35 = vadd.s32 %v1795_v9, %v1793_v40  ;;  %v2012_v6 = vsel %vm2010_vm15, %v2011_v16, %v2009_v41  ;;  %v2131_v51 = vsel %vm1923_vm4, %v3005_v47, %v4386_v8  ;;  %v2147_v27 = vadd.f32 %v3005_v47, %v4411_v23 }
 0x526   : > { %v2088_v61 = vmax.f32 %v2012_v6, 1e-10  ;;  %v1820_v17 = vpop.xlane.xlu1 %1819  ;;  %v4877_v42 = vand.u32 4294967168, %v4869_v21  ;;  %v2025_v40 = vand.u32 2147483648, %v4853_v3  ;;  %v1851_v6 = vshll.u32 %v1850_v36, 16 }
 0x527   : > { %v4872_v7 = vand.u32 4294967168, %v4867_v35  ;;  %v1821_v52 = vcvt.f32.s32 %v1820_v17  ;;  %v1906_v36 = vcvt.f32.s32 %v4767_v56 }
 0x528   : > { %v3007_v9 = vpop.eup %3006  ;;  %3016 = vrcp.f32 %v2088_v61  ;;  %vm2036_vm0 = vcmp.eq.f32.partialorder %v4877_v42, inf  ;;  %vm2038_vm7 = vcmp.eq.f32.partialorder %v4877_v42, 0.0 }
 0x529   : > { %v3009_v14 = vpop.eup %3008  ;;  %v4885_v28 = vsel %vm1926_vm6, %v3007_v9, %v5281_v32  ;;  %3018 = vrsqrt.f32 %v4872_v7  ;;  %v4893_v26 = vadd.s32 %v1823_v37, %v1821_v52  ;;  %v2150_v53 = vadd.f32 %v3007_v9, %v4456_v63 }
 0x52a   : > { %v3011_v31 = vpop.eup %3010  ;;  %v2000_v55 = vmul.f32 %v3009_v14, %v4849_v5  ;;  %3020 = vrsqrt.f32 %v4877_v42  ;;  %v1878_v52 = vcvt.f32.s32 %v4761_v58  ;;  %vm2015_vm10 = vcmp.eq.f32.partialorder %v4872_v7, inf }
 0x52b   : > { %v2021_v4 = vmul.f32 %v3011_v31, %v4853_v3  ;;  %v4905_v12 = vand.u32 4294967168, %v4893_v26  ;;  %3022 = vrcp.f32 %v2147_v27  ;;  %vm2017_vm11 = vcmp.eq.f32.partialorder %v4872_v7, 0.0 }
 0x52c   : > { %v2002_v20 = vsel %vm2001_vm12, %v4849_v5, %v2000_v55  ;;  %v2018_v56 = vand.u32 2147483648, %v4872_v7  ;;  %v2039_v32 = vand.u32 2147483648, %v4877_v42  ;;  %vm1929_vm12 = vcmp.eq.s32.totalorder %v4319_v0, %v4867_v35 }
 0x52d   : > { %v3013_v54 = vpop.eup %3012  ;;  %v2005_v48 = vsel %vm2003_vm14, %v2004_v38, %v2002_v20  ;;  %v2023_v8 = vsel %vm2022_vm3, %v4853_v3, %v2021_v4  ;;  %3024 = vrsqrt.f32 %v4905_v12  ;;  %v1865_v3 = vshll.u32 %v1864_v62, 16 }
 0x52e   : > { %v2196_v23 = vmul.f32 %v3013_v54, %v2132_v49  ;;  %v2087_v63 = vmax.f32 %v2005_v48, 1e-10  ;;  %v2026_v16 = vsel %vm2024_vm1, %v2025_v40, %v2023_v8  ;;  %v1848_v39 = vpop.xlane.xlu1 %1847  ;;  %v3015_v41 = vpop.eup %3014  ;;  %vm2029_vm13 = vcmp.eq.f32.partialorder %v4905_v12, inf }
 0x52f   : > { %v2090_v37 = vmax.f32 %v2026_v16, 1e-10  ;;  %v1849_v61 = vcvt.f32.s32 %v1848_v39  ;;  %v4914_v17 = vsel %vm1925_vm5, %v3015_v41, %v4375_v13  ;;  %v2149_v5 = vadd.f32 %v3015_v41, %v4443_v34  ;;  %v5284_v41 = vld [vmem:[#allocation6_spill] sm:$0xff] }
 0x530   : > { %3026 = vrcp.f32 %v2087_v63  ;;  %v1892_v13 = vcvt.f32.s32 %v4771_v44  ;;  %vm2031_vm15 = vcmp.eq.f32.partialorder %v4905_v12, 0.0  ;;  %v2032_v63 = vand.u32 2147483648, %v4905_v12 }
 0x531   : > { %3028 = vrcp.f32 %v2090_v37  ;;  %v4917_v49 = vadd.s32 %v1851_v6, %v1849_v61  ;;  %v5285_v61 = vld [vmem:[#allocation12_spill] sm:$0xff]  ;;  %vm1932_vm14 = vcmp.eq.s32.totalorder %v4325_v57, %v4869_v21  ;;  %vm1931_vm3 = vcmp.eq.s32.totalorder %v5277_v15, %v4893_v26 }
 0x532   : > { %v3017_v47 = vpop.eup %3016  ;;  %3030 = vrcp.f32 %v2149_v5 }
 0x533   : > { %v3019_v43 = vpop.eup %3018  ;;  %v4925_v9 = vsel %vm1928_vm2, %v3017_v47, %v5282_v18  ;;  %v4928_v34 = vand.u32 4294967168, %v4917_v49  ;;  %3032 = vrcp.f32 %v2150_v53  ;;  %v2152_v19 = vadd.f32 %v3017_v47, %v5283_v11  ;;  %v5286_v18 = vld [vmem:[#allocation5_spill] sm:$0xff] }
 0x534   : > { %v3021_v62 = vpop.eup %3020  ;;  %v2014_v58 = vmul.f32 %v3019_v43, %v4872_v7  ;;  %v1879_v43 = vshll.u32 %v1878_v52, 16  ;;  %v1893_v11 = vshll.u32 %v1892_v13, 16  ;;  %v1907_v52 = vshll.u32 %v1906_v36, 16 }
 0x535   : > { %v2035_v44 = vmul.f32 %v3021_v62, %v4877_v42  ;;  %3034 = vrsqrt.f32 %v4928_v34  ;;  %v3023_v38 = vpop.eup %3022  ;;  %vm2043_vm4 = vcmp.eq.f32.partialorder %v4928_v34, inf  ;;  %vm2045_vm6 = vcmp.eq.f32.partialorder %v4928_v34, 0.0 }
 0x536   : > { %v2016_v14 = vsel %vm2015_vm10, %v4872_v7, %v2014_v58  ;;  %3036 = vrcp.f32 %v2152_v19  ;;  %v1862_v4 = vpop.xlane.xlu0 %1861  ;;  %v2195_v7 = vmul.f32 %v3023_v38, %v2131_v51  ;;  %v2046_v36 = vand.u32 2147483648, %v4928_v34 }
 0x537   : > { %v2019_v31 = vsel %vm2017_vm11, %v2018_v56, %v2016_v14  ;;  %v2037_v55 = vsel %vm2036_vm0, %v4877_v42, %v2035_v44  ;;  %v3025_v27 = vpop.eup %3024  ;;  %v1863_v20 = vcvt.f32.s32 %v1862_v4 }
 0x538   : > { %v2089_v53 = vmax.f32 %v2019_v31, 1e-10  ;;  %v2040_v54 = vsel %vm2038_vm7, %v2039_v32, %v2037_v55  ;;  %v2028_v48 = vmul.f32 %v3025_v27, %v4905_v12  ;;  %v2211_v42 = vpack.c.bf16 %v2196_v23, %v2195_v7 }
 0x539   : > { %v2092_v40 = vmax.f32 %v2040_v54, 1e-10  ;;  %v4950_v16 = vadd.s32 %v1865_v3, %v1863_v20  ;;  %v1920_v54 = vcvt.f32.s32 %v4776_v59  ;;  %v5288_v59 = vld [vmem:[#allocation9_spill] sm:$0xff] }
 0x53a   : > { %v3027_v8 = vpop.eup %3026  ;;  %3038 = vrcp.f32 %v2089_v53  ;;  %v2030_v6 = vsel %vm2029_vm13, %v4905_v12, %v2028_v48  ;;  %v1876_v37 = vpop.xlane.xlu1 %1875  ;;  %2763 = vmatprep.subr.bf16.mxu1 %v2211_v42 }
 0x53b   : > { %v3029_v39 = vpop.eup %3028  ;;  %v4956_v51 = vsel %vm1927_vm9, %v3027_v8, %v5284_v41  ;;  %3040 = vrcp.f32 %v2092_v40  ;;  %v2151_v5 = vadd.f32 %v3027_v8, %v5285_v61  ;;  %v2033_v3 = vsel %vm2031_vm15, %v2032_v63, %v2030_v6  ;;  %2764 = vmatpush3.bf16.xpose.msra.mxu1 %v2211_v42  ;;  %v5287_v40 = vld [vmem:[#allocation10_spill] sm:$0xff] }
 0x53c   : > { %v3031_v47 = vpop.eup %3030  ;;  %v4964_v23 = vsel %vm1930_vm8, %v3029_v39, %v5286_v18  ;;  %v4967_v62 = vand.u32 4294967168, %v4950_v16  ;;  %v2091_v10 = vmax.f32 %v2033_v3, 1e-10  ;;  %v1877_v58 = vcvt.f32.s32 %v1876_v37  ;;  %v5289_v37 = vld [vmem:[#allocation18_spill] sm:$0xff] }
 0x53d   : > { %v3033_v60 = vpop.eup %3032  ;;  %v2197_v12 = vmul.f32 %v3031_v47, %v4914_v17  ;;  %3042 = vrcp.f32 %v2151_v5  ;;  %v2154_v44 = vadd.f32 %v3029_v39, %v4626_v30  ;;  %v1921_v41 = vshll.u32 %v1920_v54, 16 }
 0x53e   : > { %3044 = vrsqrt.f32 %v4967_v62  ;;  %v4971_v50 = vadd.s32 %v1879_v43, %v1877_v58  ;;  %v1904_v33 = vpop.xlane.xlu1 %1903  ;;  %v2198_v56 = vmul.f32 %v3033_v60, %v4885_v28  ;;  %vm2050_vm1 = vcmp.eq.f32.partialorder %v4967_v62, inf }
 0x53f   : > { %v3035_v19 = vpop.eup %3034  ;;  %3046 = vrcp.f32 %v2091_v10  ;;  %v1905_v17 = vcvt.f32.s32 %v1904_v33  ;;  %v1890_v38 = vpop.xlane.xlu0 %1889  ;;  %v2053_v5 = vand.u32 2147483648, %v4967_v62  ;;  %vm2052_vm5 = vcmp.eq.f32.partialorder %v4967_v62, 0.0 }
 0x540   : > { %v3037_v14 = vpop.eup %3036  ;;  %v2042_v32 = vmul.f32 %v3035_v19, %v4928_v34  ;;  %v4980_v13 = vand.u32 4294967168, %v4971_v50  ;;  %v2212_v31 = vpack.c.bf16 %v2198_v56, %v2197_v12  ;;  %v1891_v30 = vcvt.f32.s32 %v1890_v38 }
 0x541   : > { %v2200_v55 = vmul.f32 %v3037_v14, %v4925_v9  ;;  %v4984_v4 = vadd.s32 %v1907_v52, %v1905_v17  ;;  %3048 = vrcp.f32 %v2154_v44  ;;  %vm1933_vm9 = vcmp.eq.s32.totalorder %v4425_v29, %v4917_v49 }
 0x542   : > { %v2044_v28 = vsel %vm2043_vm4, %v4928_v34, %v2042_v32  ;;  %3050 = vrsqrt.f32 %v4980_v13  ;;  %2765 = vmatprep.subr.bf16.mxu1 %v2212_v31  ;;  %v4990_v7 = vadd.s32 %v1893_v11, %v1891_v30  ;;  %vm2057_vm2 = vcmp.eq.f32.partialorder %v4980_v13, inf }
 0x543   : > { %v2047_v27 = vsel %vm2045_vm6, %v2046_v36, %v2044_v28  ;;  %v4998_v48 = vand.u32 4294967168, %v4984_v4  ;;  %2766 = vmatpush3.bf16.xpose.msra.mxu1 %v2212_v31  ;;  %v1918_v35 = vpop.xlane.xlu0 %1917  ;;  %vm2059_vm10 = vcmp.eq.f32.partialorder %v4980_v13, 0.0  ;;  %vm1934_vm13 = vcmp.eq.s32.totalorder %v4489_v46, %v4950_v16 }
 0x544   : > { %v3039_v53 = vpop.eup %3038  ;;  %v2093_v20 = vmax.f32 %v2047_v27, 1e-10  ;;  %v5005_v0 = vand.u32 4294967168, %v4990_v7  ;;  %v1919_v21 = vcvt.f32.s32 %v1918_v35 }
 0x545   : > { %v3041_v9 = vpop.eup %3040  ;;  %v4993_v34 = vsel %vm1929_vm12, %v3039_v53, %v5287_v40  ;;  %v2153_v8 = vadd.f32 %v3039_v53, %v4622_v2  ;;  %vm2071_vm11 = vcmp.eq.f32.partialorder %v4998_v48, inf  ;;  %vm2073_vm0 = vcmp.eq.f32.partialorder %v4998_v48, 0.0 }
 0x546   : > { %v5002_v63 = vsel %vm1932_vm14, %v3041_v9, %v5288_v59  ;;  %3052 = vrcp.f32 %v2093_v20  ;;  %v2156_v43 = vadd.f32 %v3041_v9, %v4633_v25  ;;  %v5020_v26 = vadd.s32 %v1921_v41, %v1919_v21 }
 0x547   : > { %v3043_v42 = vpop.eup %3042  ;;  %3054 = vrsqrt.f32 %v4998_v48  ;;  %vm2064_vm8 = vcmp.eq.f32.partialorder %v5005_v0, inf  ;;  %v2074_v32 = vand.u32 2147483648, %v4998_v48  ;;  %vm2066_vm7 = vcmp.eq.f32.partialorder %v5005_v0, 0.0 }
 0x548   : > { %v3045_v39 = vpop.eup %3044  ;;  %3056 = vrsqrt.f32 %v5005_v0  ;;  %v2199_v6 = vmul.f32 %v3043_v42, %v4956_v51  ;;  %v5023_v58 = vand.u32 4294967168, %v5020_v26 }
 0x549   : > { %v3047_v57 = vpop.eup %3046  ;;  %v2049_v2 = vmul.f32 %v3045_v39, %v4967_v62  ;;  %3058 = vrcp.f32 %v2153_v8  ;;  %v5292_v39 = vld [vmem:[#allocation17_spill] sm:$0xff] }
 0x54a   : > { %v2139_v61 = vsel %vm1931_vm3, %v3047_v57, %v5289_v37  ;;  %v2155_v47 = vadd.f32 %v3047_v57, %v4629_v22  ;;  %v2213_v18 = vpack.c.bf16 %v2200_v55, %v2199_v6  ;;  %vm2078_vm15 = vcmp.eq.f32.partialorder %v5023_v58, inf }
 0x54b   : > { %v2051_v15 = vsel %vm2050_vm1, %v4967_v62, %v2049_v2  ;;  %v3049_v3 = vpop.eup %3048  ;;  %v2060_v62 = vand.u32 2147483648, %v4980_v13  ;;  %vm2080_vm4 = vcmp.eq.f32.partialorder %v5023_v58, 0.0  ;;  %v5293_v2 = vld [vmem:[#allocation15_spill] sm:$0xff]  ;;  %vm3170_vm1 = vmmov 0  }
 0x54c   : > { %v2054_v60 = vsel %vm2052_vm5, %v2053_v5, %v2051_v15  ;;  %3060 = vrcp.f32 %v2155_v47  ;;  %v3051_v51 = vpop.eup %3050  ;;  %2767 = vmatprep.subr.bf16.mxu1 %v2213_v18  ;;  %v2202_v22 = vmul.f32 %v3049_v3, %v4964_v23  ;;  %v5295_v5 = vld [vmem:[#allocation21_spill] sm:$0xff]  ;;  %vm2468_vm5 = vcmask 261120  }
 0x54d   : > { %v2094_v10 = vmax.f32 %v2054_v60, 1e-10  ;;  %v2056_v25 = vmul.f32 %v3051_v51, %v4980_v13  ;;  %2768 = vmatpush3.bf16.xpose.msra.mxu1 %v2213_v18  ;;  %3062 = vrcp.f32 %v2156_v43  ;;  %v5296_v43 = vld [vmem:[#allocation19_spill] sm:$0xff] }
 0x54f   : > { %3064 = vrcp.f32 %v2094_v10  ;;  %v2058_v11 = vsel %vm2057_vm2, %v4980_v13, %v2056_v25 }
 0x550   : > { %v3053_v12 = vpop.eup %3052  ;;  %3066 = vrsqrt.f32 %v5023_v58  ;;  %v2061_v19 = vsel %vm2059_vm10, %v2060_v62, %v2058_v11  ;;  %v5300_v11 = vld [vmem:[#allocation22_spill] sm:$0xff] }
 0x551   : > { %v3055_v23 = vpop.eup %3054  ;;  %v2141_v52 = vsel %vm1933_vm9, %v3053_v12, %v4639_v24  ;;  %v2157_v33 = vadd.f32 %v3053_v12, %v4643_v1  ;;  %v2095_v44 = vmax.f32 %v2061_v19, 1e-10  ;;  %v2067_v24 = vand.u32 2147483648, %v5005_v0 }
 0x552   : > { %v3057_v56 = vpop.eup %3056  ;;  %v2070_v14 = vmul.f32 %v3055_v23, %v4998_v48 }
 0x553   : > { %v3059_v29 = vpop.eup %3058  ;;  %v2063_v49 = vmul.f32 %v3057_v56, %v5005_v0  ;;  %3068 = vrcp.f32 %v2157_v33 }
 0x554   : > { %3070 = vrcp.f32 %v2095_v44  ;;  %v2072_v1 = vsel %vm2071_vm11, %v4998_v48, %v2070_v14  ;;  %v2201_v17 = vmul.f32 %v3059_v29, %v4993_v34  ;;  %v5290_v34 = vld [vmem:[#allocation20_spill] sm:$0xff]  ;;  %v5302_v29 = vld [vmem:[#allocation25_spill] sm:$0xff] }
 0x555   : > { %v2065_v36 = vsel %vm2064_vm8, %v5005_v0, %v2063_v49  ;;  %v2075_v13 = vsel %vm2073_vm0, %v2074_v32, %v2072_v1  ;;  %v2081_v0 = vand.u32 2147483648, %v5023_v58  ;;  %v5301_v44 = vld [vmem:[#allocation16_spill] sm:$0xff]  ;;  %v5304_v1 = vld [vmem:[#allocation27_spill] sm:$0xff] }
 0x556   : > { %v3061_v38 = vpop.eup %3060  ;;  %v2068_v31 = vsel %vm2066_vm7, %v2067_v24, %v2065_v36  ;;  %v2097_v55 = vmax.f32 %v2075_v13, 1e-10  ;;  %v2214_v28 = vpack.c.bf16 %v2202_v22, %v2201_v17  ;;  %v5298_v22 = vld [vmem:[#allocation24_spill] sm:$0xff]  ;;  %vm1938_vm3 = vcmp.eq.s32.totalorder %v5301_v44, %v5020_v26 }
 0x557   : > { %v2096_v30 = vmax.f32 %v2068_v31, 1e-10  ;;  %v2203_v27 = vmul.f32 %v3061_v38, %v2139_v61  ;;  %v3063_v53 = vpop.eup %3062  ;;  %v5294_v61 = vld [vmem:[#allocation11_spill] sm:$0xff] }
 0x558   : > { %3072 = vrcp.f32 %v2097_v55  ;;  %2769 = vmatprep.subr.bf16.mxu1 %v2214_v28  ;;  %v2204_v20 = vmul.f32 %v3063_v53, %v5002_v63  ;;  %v5291_v63 = vld [vmem:[#allocation14_spill] sm:$0xff]  ;;  %vm1936_vm12 = vcmp.eq.s32.totalorder %v5294_v61, %v4990_v7  ;;  %v5299_v7 = vld [vmem:[#allocation13_spill] sm:$0xff]  ;;  %v3169_v55 = vmov 0.0  }
 0x559   : > { %v3065_v54 = vpop.eup %3064  ;;  %3074 = vrcp.f32 %v2096_v30  ;;  %2770 = vmatpush3.bf16.xpose.msra.mxu1 %v2214_v28  ;;  %vm1935_vm6 = vcmp.eq.s32.totalorder %v5291_v63, %v4971_v50  ;;  %v5297_v50 = vld [vmem:[#allocation23_spill] sm:$0xff]  ;;  %vm1937_vm14 = vcmp.eq.s32.totalorder %v5299_v7, %v4984_v4  ;;  %v5303_v4 = vld [vmem:[#allocation26_spill] sm:$0xff]  ;;  %2783 = vmatprep.subr.bf16.mxu0 %v3169_v55 }
 0x55a   : > { %v3067_v9 = vpop.eup %3066  ;;  %v2142_v40 = vsel %vm1934_vm13, %v3065_v54, %v4659_v45  ;;  %v2158_v48 = vadd.f32 %v3065_v54, %v5290_v34  ;;  %v2215_v59 = vpack.c.bf16 %v2204_v20, %v2203_v27  ;;  %v5305_v17 = vpack.c.bf16 %v5303_v4, %v5304_v1  ;;  %2787 = vmatprep.mubr.msk.bf16.mxu0 %vm3170_vm1, %v3169_v55 }
 0x55b   : > { %v2077_v8 = vmul.f32 %v3067_v9, %v5023_v58 }
 0x55c   : > { %3076 = vrcp.f32 %v2158_v48  ;;  %2771 = vmatprep.subr.bf16.mxu1 %v2215_v59  ;;  %v2427_v48 = vpop.permute.xlu0 %2426 }
 0x55d   : > { %v3069_v35 = vpop.eup %3068  ;;  %v2079_v46 = vsel %vm2078_vm15, %v5023_v58, %v2077_v8 }
 0x55e   : > { %v3071_v16 = vpop.eup %3070  ;;  %v2082_v45 = vsel %vm2080_vm4, %v2081_v0, %v2079_v46  ;;  %v2205_v42 = vmul.f32 %v3069_v35, %v2141_v52 }
 0x55f   : > { %v2143_v41 = vsel %vm1935_vm6, %v3071_v16, %v5292_v39  ;;  %v2098_v57 = vmax.f32 %v2082_v45, 1e-10  ;;  %v2159_v21 = vadd.f32 %v3071_v16, %v5293_v2 }
 0x561   : > { %3078 = vrcp.f32 %v2098_v57  ;;  %2772 = vmatpush3.bf16.xpose.msra.mxu1 %v2215_v59  ;;  %v2863_v57 = vld [vmem:[%s5141_s7] sm:$0xff]  }
 0x562   : > { %v3073_v6 = vpop.eup %3072  ;;  %3080 = vrcp.f32 %v2159_v21 }
 0x563   : > { %v3075_v37 = vpop.eup %3074  ;;  %v2161_v47 = vadd.f32 %v3073_v6, %v5295_v5  ;;  %v2145_v23 = vsel %vm1937_vm14, %v3073_v6, %v5300_v11 }
 0x564   : > { %v2144_v15 = vsel %vm1936_vm12, %v3075_v37, %v5296_v43  ;;  %v2160_v18 = vadd.f32 %v3075_v37, %v5297_v50 }
 0x565   : > { %3082 = vrcp.f32 %v2161_v47 }
 0x566   : > { %v3077_v3 = vpop.eup %3076  ;;  %3084 = vrcp.f32 %v2160_v18 }
 0x567   : > { %v2206_v60 = vmul.f32 %v3077_v3, %v2142_v40 }
 0x569   : > { %v2216_v51 = vpack.c.bf16 %v2206_v60, %v2205_v42 }
 0x56b   : > { %v3079_v10 = vpop.eup %3078  ;;  %2773 = vmatprep.subr.bf16.mxu1 %v2216_v51 }
 0x56c   : > { %v3081_v58 = vpop.eup %3080  ;;  %2774 = vmatpush3.bf16.xpose.msra.mxu1 %v2216_v51  ;;  %v2162_v25 = vadd.f32 %v3079_v10, %v5298_v22  ;;  %v2146_v49 = vsel %vm1938_vm3, %v3079_v10, %v5302_v29 }
 0x56d   : > { %v2207_v62 = vmul.f32 %v3081_v58, %v2143_v41 }
 0x56e   : > { %3086 = vrcp.f32 %v2162_v25 }
 0x56f   : > { %v3083_v12 = vpop.eup %3082 }
 0x570   : > { %v3085_v52 = vpop.eup %3084  ;;  %v2209_v19 = vmul.f32 %v3083_v12, %v2145_v23 }
 0x571   : > { %v2208_v33 = vmul.f32 %v3085_v52, %v2144_v15 }
 0x573   : > { %v2217_v56 = vpack.c.bf16 %v2208_v33, %v2207_v62 }
 0x575   : > { %2775 = vmatprep.subr.bf16.mxu1 %v2217_v56 }
 0x576   : > { %2776 = vmatpush3.bf16.xpose.msra.mxu1 %v2217_v56 }
 0x578   : > { %v3087_v14 = vpop.eup %3086 }
 0x579   : > { %v2210_v32 = vmul.f32 %v3087_v14, %v2146_v49 }
 0x57b   : > { %v2218_v24 = vpack.c.bf16 %v2210_v32, %v2209_v19 }
 0x57d   : > { %2777 = vmatprep.subr.bf16.mxu1 %v2218_v24 }
 0x57e   : > { %2778 = vmatpush3.bf16.xpose.msra.mxu1 %v2218_v24 }
 0x581   : > { %v2422_v26 = vpop.permute.xlu1 %2421 }
 0x585   : > { %2780 = vmatmul.mubr.bf16.vlgmr.msra.gmra.mrb[0].mxu1 %v5305_v17  ;;  %v2432_v28 = vpop.permute.xlu1 %2431 }
 0x589   : > { %v2761_v36 = vpop.f32.mrb[20].mxu0  ;;  %v2437_v8 = vpop.permute.xlu1 %2436 }
 0x58a   : > { %v2351_v13 = vpop.f32.mrb[21].mxu0 }
 0x58b   : > { %v2762_v38 = vpop.f32.mrb[22].mxu0 }
 0x58c   : > { %v2354_v31 = vpop.f32.mrb[23].mxu0 }
 0x58d   : > { %v2456_v2 = vpop.permute.xlu1 %2455 }
 0x591   : > { %v2461_v61 = vpop.permute.xlu1 %2460 }
 0x658   : > { %v2781_v30 = vpop.f32.mrb[0].mxu1 }
 0x659   : > { %v2409_v27 = vadd.f32 %v2781_v30, %v2761_v36  ;;  %v2400_v53 = vpop.f32.mrb[1].mxu1 }
 0x65a   : > { %v2401_v54 = vadd.f32 %v2400_v53, %v2351_v13  ;;  %v2782_v20 = vpop.f32.mrb[2].mxu1 }
 0x65b   : > { %v2441_v9 = vadd.f32 %v2432_v28, %v2409_v27  ;;  %v2412_v40 = vadd.f32 %v2782_v20, %v2762_v38  ;;  %v2403_v34 = vpop.f32.mrb[3].mxu1 }
 0x65c   : > { %v2439_v59 = vadd.f32 %v2422_v26, %v2401_v54  ;;  %v2404_v0 = vadd.f32 %v2403_v34, %v2354_v31 }
 0x65d   : > { %v2442_v35 = vadd.f32 %v2437_v8, %v2412_v40  ;;  %v2445_v16 = vmax.f32 %v2441_v9, 0.0 }
 0x65e   : > { %v2440_v46 = vadd.f32 %v2427_v48, %v2404_v0  ;;  %v2443_v45 = vmax.f32 %v2439_v59, 0.0 }
 0x65f   : > { %v2446_v63 = vmax.f32 %v2442_v35, 0.0 }
 0x660   : > { %v2444_v42 = vmax.f32 %v2440_v46, 0.0 }
 0x661   : > { %v2450_v39 = vpack.c.bf16 %v2446_v63, %v2445_v16 }
 0x662   : > { %v2449_v41 = vpack.c.bf16 %v2444_v42, %v2443_v45 }
 0x664   : > { %2784 = vmatpush3.bf16.msra.mxu0 %v2449_v41 }
 0x665   : > { %2785 = vmatprep.subr.bf16.mxu0 %v3169_v55 }
 0x668   : > { %2786 = vmatpush3.bf16.msra.mxu0 %v2450_v39 }
 0x66b   : > { %2788 = vmatmul.mubr.msk.bf16.vlgmr.msra.gmra.mrb[24].mxu0 %vm2468_vm5, %v2863_v57 }
 0x73e   : > { %v2506_v21 = vpop.f32.mrb[24].mxu0 }
 0x73f   : > { %v2507_v6 = vadd.f32 %v2506_v21, %v2456_v2  ;;  %v2789_v37 = vpop.f32.mrb[25].mxu0 }
 0x740   : > { %v2509_v5 = vpop.f32.mrb[26].mxu0 }
 0x741   : > { %v2513_v47 = vmax.f32 %v2507_v6, 0.0  ;;  %v2510_v43 = vadd.f32 %v2509_v5, %v2461_v61  ;;  %v2790_v15 = vpop.f32.mrb[27].mxu0 }
 0x743   : > { %2515 = vst [vmem:[%s392_s29] sm:$0xff] %v2513_v47  ;;  %v2514_v50 = vmax.f32 %v2510_v43, 0.0 }
 0x745   : > { %2516 = vst [vmem:[%s392_s29 + $0x8] sm:$0xff] %v2514_v50 }
 0x746   : > { %3101 = shalt.err (!%p3098_p5)
}
 0x747   : > { %s3102_s27 = scalar_lea.hbm %s5086_s23, 256  ;;  %s3106_s18 = scalar_lea.hbm %s5143_s9, 512 }
 0x748   : > { %p3103_p6 = scmp.ne.s32.totalorder %s5086_s23, %s3102_s27  ;;  %p3107_p10 = scmp.lt.u32.totalorder %s5086_s23, %s5143_s9 }
 0x749   : > { %p3108_p11 = scmp.lt.u32.totalorder %s3106_s18, %s3102_s27  ;;  %p3110_p13 = scmp.lt.u32.totalorder %s3102_s27, %s5086_s23 }
 0x74a   : > { %p3104_p7 = pnand %p3103_p6, %p3264_p4 }
 0x74b   : > { %p3109_p12 = por %p3108_p11, %p3107_p10 }
 0x74c   : > { %p3105_p9 = pneg %p3104_p7 }
 0x74d   : > { %p3111_p0 = por %p3110_p13, %p3109_p12 }
 0x74f   : > { %p3112_p1 = pnand %p3111_p0, %p3105_p9 }
 0x751   : > { %3115 = shalt.err (!%p3112_p1)
}
 0x752   : > { %s3172_s25 = smov 128   ;;  %s3173_s26 = smov 8  }
 0x753   : > { %2797 = dma.vmem_to_hbm [thread:$0]  (%p3264_p4), %s5081_s15, 256, %s5086_s23, %s5088_s24, %s3172_s25, %s3172_s25, %s3173_s26  }
 0x754 PF: > { %p2803_p2 = scmp.ge.s32.totalorder %s3166_s14, 2  ;;  %s2547_s28 = sand.u32 1, %s3146_s30  }
 0x755   : > { %s2548_s27 = scalar_lea.sflag [#allocation3], %s2547_s28 }
 0x756   : > { %p2800_p3 = pnand %p2803_p2, %p3271_p8 }
 0x758   : > { %3141 = dma.done.wait (!%p2800_p3), %s2548_s27, 256  }
 0x759   : > { %3143 = vsyncadd (!%p2800_p3), %s2548_s27, 4294967040  ;;  %s22_s14 = sadd.s32 1, %s3166_s14   ;;  %s5306_s30 = smov %s3150_s10 }
 0x75a   : > { %p19_p5 = scmp.ge.s32.totalorder %s22_s14, 4   ;;  %s5307_s10 = smov %s3154_s11 }
 0x75b   : > { %s5308_s11 = smov %s3277_s22  ;;  %s5309_s12 = smov %s3162_s13 }
 0x75c   : > { %s5310_s13 = smov %s5312_s17  ;;  %21 = sbr.rel (!%p19_p5) target bundleno = 4 (0x4), region = 100 }
 0x763   :  { %2553 = vsyncpa [#allocation3], 1 }
 0x764   :  { %2555 = vsyncpa [#allocation3 + $0x1], 1 }

</bundles_post_ra>
